<compile_context>
chip_gen: v6e
topology: v6e:2x2x1
jax: 0.10.0
libtpu: 0.0.40
codegen_flags: <defaults>
</compile_context>

<pallas_src>
import math
import jax
import jax.numpy as jnp
from jax import lax
from jax.experimental import pallas as pl
from jax.experimental.pallas import tpu as pltpu

# ---- hyperparameters (small, consistent with the module's forward) ----
ROOT_SIZE     = 6
FEATURE_SIZE  = 9
LATENT_SIZE   = 16
BATCH_SIZE    = 2
NINP          = 32          # embedding dim E
NHEAD         = 2
NHID          = 64
NLAYERS       = 2
MAX_NUM_LIMBS = 8           # sequence length L
HEAD_DIM      = NINP // NHEAD
LN_EPS        = 1e-5
GVEC_W        = max(NINP, 2 * LATENT_SIZE)   # packed global-vector slab width
LVEC_W        = max(3 * NINP, NHID)          # packed per-layer vector slab width


def _vmem():
    return pl.BlockSpec(memory_space=pltpu.MemorySpace.VMEM)


def _layernorm(x, gamma, beta):
    mean = jnp.mean(x, axis=-1, keepdims=True)
    var = jnp.mean((x - mean) ** 2, axis=-1, keepdims=True)
    return (x - mean) * lax.rsqrt(var + LN_EPS) * gamma + beta


# --------------------------------------------------------------------------
# Fused kernel: embed -> NLAYERS encoder layers -> final LN -> heads -> reparam
# --------------------------------------------------------------------------
def pose_encoder_kernel(x0_ref, x1_ref, eps_ref, gvec_ref, wr_ref, wi_ref,
                        wqkv_ref, wo_ref, w1_ref, w2_ref, lvec_ref, wmv_ref,
                        out_ref, z_scr, attn_scr):
    E, L, B, H, DH = NINP, MAX_NUM_LIMBS, BATCH_SIZE, NHEAD, HEAD_DIM
    f32 = jnp.float32

    # packed global vectors: rows [0:L]=PE, L=br, L+1=bi, L+2=gf, L+3=bf, L+4=bmv
    pe  = gvec_ref[0:L, 0:E]
    br  = gvec_ref[L:L + 1, 0:E]
    bi  = gvec_ref[L + 1:L + 2, 0:E]
    gf  = gvec_ref[L + 2:L + 3, 0:E]
    bf  = gvec_ref[L + 3:L + 4, 0:E]
    bmv = gvec_ref[L + 4:L + 5, 0:2 * LATENT_SIZE]

    # ---- embed: root + limb projections + positional encoding (batch-major flat) ----
    z0 = jnp.dot(x0_ref[...], wr_ref[...], preferred_element_type=f32) + br   # (B, E)
    z1 = jnp.dot(x1_ref[...], wi_ref[...], preferred_element_type=f32) + bi   # (B*(L-1), E)
    for b in range(B):
        z_scr[b * L:b * L + 1, :] = z0[b:b + 1, :] + pe[0:1, :]
        z_scr[b * L + 1:(b + 1) * L, :] = (
            z1[b * (L - 1):(b + 1) * (L - 1), :] + pe[1:L, :])

    scale = 1.0 / math.sqrt(DH)

    # ---- NLAYERS post-norm TransformerEncoderLayers (unrolled, z stays in VMEM) ----
    for li in range(NLAYERS):
        wqkv = wqkv_ref[li]                    # (E, 3E)
        wo   = wo_ref[li]                      # (E, E)
        w1   = w1_ref[li]                      # (E, NHID)
        w2   = w2_ref[li]                      # (NHID, E)
        vec  = lvec_ref[li]                    # (8, LVEC_W)
        bqkv = vec[0:1, 0:3 * E]
        bo   = vec[1:2, 0:E]
        b1   = vec[2:3, 0:NHID]
        b2   = vec[3:4, 0:E]
        g1   = vec[4:5, 0:E]
        be1  = vec[5:6, 0:E]
        g2   = vec[6:7, 0:E]
        be2  = vec[7:8, 0:E]

        z = z_scr[...]                                                        # (B*L, E)
        qkv = jnp.dot(z, wqkv, preferred_element_type=f32) + bqkv             # (B*L, 3E)
        q = qkv[:, 0:E] * scale                                               # scale folded once
        k = qkv[:, E:2 * E]
        v = qkv[:, 2 * E:3 * E]

        # per-(batch, head) score / softmax / PV; heads written directly into scratch
        for b in range(B):
            lo = b * L
            for h in range(H):
                c0, c1 = h * DH, (h + 1) * DH
                s = lax.dot_general(q[lo:lo + L, c0:c1], k[lo:lo + L, c0:c1],
                                    (((1,), (1,)), ((), ())),
                                    preferred_element_type=f32)               # (L, L)
                s = s - jnp.max(s, axis=-1, keepdims=True)
                p = jnp.exp(s)
                p = p / jnp.sum(p, axis=-1, keepdims=True)
                attn_scr[lo:lo + L, c0:c1] = jnp.dot(
                    p, v[lo:lo + L, c0:c1], preferred_element_type=f32)

        # flattened output projection + residual + LN + FFN + residual + LN
        attn = jnp.dot(attn_scr[...], wo, preferred_element_type=f32) + bo    # (B*L, E)
        src = _layernorm(z + attn, g1, be1)
        ff = jnp.maximum(jnp.dot(src, w1, preferred_element_type=f32) + b1, 0.0)
        ff = jnp.dot(ff, w2, preferred_element_type=f32) + b2
        z_scr[...] = _layernorm(src + ff, g2, be2)

    # ---- final encoder norm + mean/logvar heads (root token) + reparameterization ----
    z_root = jnp.concatenate([z_scr[b * L:b * L + 1, :] for b in range(B)], axis=0)  # (B, E)
    hroot = _layernorm(z_root, gf, bf)
    mv = jnp.dot(hroot, wmv_ref[...], preferred_element_type=f32) + bmv       # (B, 2*latent)
    mu = mv[:, 0:LATENT_SIZE]
    lv = mv[:, LATENT_SIZE:2 * LATENT_SIZE]
    zs = mu + jnp.exp(0.5 * lv) * eps_ref[...]
    out_ref[0:B, :] = zs
    out_ref[B:2 * B, :] = mu
    out_ref[2 * B:3 * B, :] = lv


# --------------------------------------------------------------------------
# Wrapper: one pallas_call per forward
# --------------------------------------------------------------------------
def pose_encoder_forward(packed, x, eps_key):
    B, L = BATCH_SIZE, MAX_NUM_LIMBS
    x0 = x[:, :ROOT_SIZE]                                              # (B, root)
    x1 = x[:, ROOT_SIZE:].reshape(B * (L - 1), FEATURE_SIZE)           # batch-major limbs
    eps = jax.random.uniform(eps_key, (B, LATENT_SIZE), jnp.float32)   # torch.rand_like

    out = pl.pallas_call(
        pose_encoder_kernel,
        out_shape=jax.ShapeDtypeStruct((3 * B, LATENT_SIZE), jnp.float32),
        in_specs=[_vmem()] * 12,
        out_specs=_vmem(),
        scratch_shapes=[pltpu.VMEM((B * L, NINP), jnp.float32),   # z, resident across layers
                        pltpu.VMEM((B * L, NINP), jnp.float32)],  # per-head attention staging
    )(x0, x1, eps, packed["gvec"], packed["wr"], packed["wi"],
      packed["wqkv"], packed["wo"], packed["w1"], packed["w2"],
      packed["lvec"], packed["wmv"])
    return out[0:B], out[B:2 * B], out[2 * B:3 * B]   # z_sample, mu, logvar


# --------------------------------------------------------------------------
# Parameter init + one-time packing into the slabs the fused kernel consumes
# --------------------------------------------------------------------------
def positional_encoding(max_len, d_model):
    position = jnp.arange(max_len, dtype=jnp.float32)[:, None]
    div_term = jnp.exp(jnp.arange(0, d_model, 2, dtype=jnp.float32)
                       * (-math.log(10000.0) / d_model))
    pe = jnp.zeros((max_len, d_model), jnp.float32)
    pe = pe.at[:, 0::2].set(jnp.sin(position * div_term))
    pe = pe.at[:, 1::2].set(jnp.cos(position * div_term))
    return pe


def init_params(key):
    def linear(k, fan_in, fan_out):
        k1, k2 = jax.random.split(k)
        bound = 1.0 / math.sqrt(fan_in)
        w = jax.random.uniform(k1, (fan_in, fan_out), jnp.float32, -bound, bound)
        b = jax.random.uniform(k2, (1, fan_out), jnp.float32, -bound, bound)
        return w, b

    keys = jax.random.split(key, 4 + NLAYERS)
    params = {}
    params["wr"], params["br"] = linear(keys[0], ROOT_SIZE, NINP)
    params["wi"], params["bi"] = linear(keys[1], FEATURE_SIZE, NINP)
    params["wm"], params["bm"] = linear(keys[2], NINP, LATENT_SIZE)
    params["wv"], params["bv"] = linear(keys[3], NINP, LATENT_SIZE)
    params["gf"] = jnp.ones((1, NINP), jnp.float32)
    params["bf"] = jnp.zeros((1, NINP), jnp.float32)

    layers = []
    for li in range(NLAYERS):
        lk = jax.random.split(keys[4 + li], 4)
        wqkv, bqkv = linear(lk[0], NINP, 3 * NINP)
        wo, bo = linear(lk[1], NINP, NINP)
        w1, b1 = linear(lk[2], NINP, NHID)
        w2, b2 = linear(lk[3], NHID, NINP)
        layers.append(dict(
            wqkv=wqkv, bqkv=bqkv, wo=wo, bo=bo,
            w1=w1, b1=b1, w2=w2, b2=b2,
            g1=jnp.ones((1, NINP), jnp.float32), be1=jnp.zeros((1, NINP), jnp.float32),
            g2=jnp.ones((1, NINP), jnp.float32), be2=jnp.zeros((1, NINP), jnp.float32),
        ))
    params["layers"] = layers
    return params


def prepare_params(params):
    """One-time packing: stack per-layer weights, pack small vectors into slabs."""
    pe = positional_encoding(MAX_NUM_LIMBS, NINP)

    def padw(a, w):
        return jnp.pad(a, ((0, 0), (0, w - a.shape[1])))

    bmv = jnp.concatenate([params["bm"], params["bv"]], axis=1)             # (1, 2*latent)
    gvec = jnp.concatenate(
        [padw(pe, GVEC_W), padw(params["br"], GVEC_W), padw(params["bi"], GVEC_W),
         padw(params["gf"], GVEC_W), padw(params["bf"], GVEC_W), padw(bmv, GVEC_W)],
        axis=0)                                                             # (L+5, GVEC_W)
    wmv = jnp.concatenate([params["wm"], params["wv"]], axis=1)             # (E, 2*latent)

    def pack_layer_vec(lp):
        rows = [lp["bqkv"], lp["bo"], lp["b1"], lp["b2"],
                lp["g1"], lp["be1"], lp["g2"], lp["be2"]]
        return jnp.concatenate([padw(r, LVEC_W) for r in rows], axis=0)     # (8, LVEC_W)

    layers = params["layers"]
    return dict(
        gvec=gvec, wmv=wmv, wr=params["wr"], wi=params["wi"],
        wqkv=jnp.stack([lp["wqkv"] for lp in layers]),
        wo=jnp.stack([lp["wo"] for lp in layers]),
        w1=jnp.stack([lp["w1"] for lp in layers]),
        w2=jnp.stack([lp["w2"] for lp in layers]),
        lvec=jnp.stack([pack_layer_vec(lp) for lp in layers]),
    )


if __name__ == "__main__":
    key = jax.random.PRNGKey(0)
    pkey, xkey, ekey = jax.random.split(key, 3)
    params = init_params(pkey)
    packed = prepare_params(params)

    d_in = ROOT_SIZE + (MAX_NUM_LIMBS - 1) * FEATURE_SIZE
    x = jax.random.normal(xkey, (BATCH_SIZE, d_in), jnp.float32)

    fwd = jax.jit(pose_encoder_forward)
    z, mu, logvar = fwd(packed, x, ekey)
    jax.block_until_ready((z, mu, logvar))

    assert z.shape == (BATCH_SIZE, LATENT_SIZE)
    assert mu.shape == (BATCH_SIZE, LATENT_SIZE)
    assert logvar.shape == (BATCH_SIZE, LATENT_SIZE)
    assert jnp.all(jnp.isfinite(z)) and jnp.all(jnp.isfinite(mu)) and jnp.all(jnp.isfinite(logvar))
    print("KERNEL_OK")
</pallas_src>

<mosaic_0001>
module attributes {stable_mosaic.version = 11 : i64} {
  func.func @pose_encoder_kernel(%arg0: memref<2x6xf32, #tpu.memory_space<vmem>>, %arg1: memref<14x9xf32, #tpu.memory_space<vmem>>, %arg2: memref<2x16xf32, #tpu.memory_space<vmem>>, %arg3: memref<13x32xf32, #tpu.memory_space<vmem>>, %arg4: memref<6x32xf32, #tpu.memory_space<vmem>>, %arg5: memref<9x32xf32, #tpu.memory_space<vmem>>, %arg6: memref<2x32x96xf32, #tpu.memory_space<vmem>>, %arg7: memref<2x32x32xf32, #tpu.memory_space<vmem>>, %arg8: memref<2x32x64xf32, #tpu.memory_space<vmem>>, %arg9: memref<2x64x32xf32, #tpu.memory_space<vmem>>, %arg10: memref<2x8x96xf32, #tpu.memory_space<vmem>>, %arg11: memref<32x32xf32, #tpu.memory_space<vmem>>, %arg12: memref<6x16xf32, #tpu.memory_space<vmem>>, %arg13: memref<16x32xf32, #tpu.memory_space<vmem>>, %arg14: memref<16x32xf32, #tpu.memory_space<vmem>>) attributes {dimension_semantics = [], scalar_prefetch = 0 : i64, scratch_operands = 2 : i64, tpu.core_type = #tpu.core_type<tc>} {
    %c0 = arith.constant 0 : index
    %c0_0 = arith.constant 0 : index
    %0 = vector.load %arg3[%c0, %c0_0] : memref<13x32xf32, #tpu.memory_space<vmem>>, vector<8x32xf32>
    %c8 = arith.constant 8 : index
    %c0_1 = arith.constant 0 : index
    %1 = vector.load %arg3[%c8, %c0_1] : memref<13x32xf32, #tpu.memory_space<vmem>>, vector<1x32xf32>
    %c9 = arith.constant 9 : index
    %c0_2 = arith.constant 0 : index
    %2 = vector.load %arg3[%c9, %c0_2] : memref<13x32xf32, #tpu.memory_space<vmem>>, vector<1x32xf32>
    %c10 = arith.constant 10 : index
    %c0_3 = arith.constant 0 : index
    %3 = vector.load %arg3[%c10, %c0_3] : memref<13x32xf32, #tpu.memory_space<vmem>>, vector<1x32xf32>
    %c11 = arith.constant 11 : index
    %c0_4 = arith.constant 0 : index
    %4 = vector.load %arg3[%c11, %c0_4] : memref<13x32xf32, #tpu.memory_space<vmem>>, vector<1x32xf32>
    %c12 = arith.constant 12 : index
    %c0_5 = arith.constant 0 : index
    %5 = vector.load %arg3[%c12, %c0_5] : memref<13x32xf32, #tpu.memory_space<vmem>>, vector<1x32xf32>
    %c0_6 = arith.constant 0 : index
    %c0_7 = arith.constant 0 : index
    %6 = vector.load %arg0[%c0_6, %c0_7] : memref<2x6xf32, #tpu.memory_space<vmem>>, vector<2x6xf32>
    %c0_8 = arith.constant 0 : index
    %c0_9 = arith.constant 0 : index
    %7 = vector.load %arg4[%c0_8, %c0_9] : memref<6x32xf32, #tpu.memory_space<vmem>>, vector<6x32xf32>
    %cst = arith.constant dense<0.000000e+00> : vector<2x32xf32>
    %8 = tpu.matmul %6, %7, %cst {dimension_numbers = #tpu.dot_dimension_numbers<[1], [0], [0], [1], [0, 0, 1, 1], [], []>} : vector<2x6xf32>, vector<6x32xf32>, vector<2x32xf32> -> vector<2x32xf32>
    %9 = vector.broadcast %1 : vector<1x32xf32> to vector<2x32xf32>
    %10 = arith.addf %8, %9 : vector<2x32xf32>
    %c0_10 = arith.constant 0 : index
    %c0_11 = arith.constant 0 : index
    %11 = vector.load %arg1[%c0_10, %c0_11] : memref<14x9xf32, #tpu.memory_space<vmem>>, vector<14x9xf32>
    %c0_12 = arith.constant 0 : index
    %c0_13 = arith.constant 0 : index
    %12 = vector.load %arg5[%c0_12, %c0_13] : memref<9x32xf32, #tpu.memory_space<vmem>>, vector<9x32xf32>
    %cst_14 = arith.constant dense<0.000000e+00> : vector<14x32xf32>
    %13 = tpu.matmul %11, %12, %cst_14 {dimension_numbers = #tpu.dot_dimension_numbers<[1], [0], [0], [1], [0, 0, 1, 1], [], []>} : vector<14x9xf32>, vector<9x32xf32>, vector<14x32xf32> -> vector<14x32xf32>
    %14 = vector.broadcast %2 : vector<1x32xf32> to vector<14x32xf32>
    %15 = arith.addf %13, %14 : vector<14x32xf32>
    %16 = vector.extract_strided_slice %10 {offsets = [0, 0], sizes = [1, 32], strides = [1, 1]} : vector<2x32xf32> to vector<1x32xf32>
    %17 = vector.extract_strided_slice %0 {offsets = [0, 0], sizes = [1, 32], strides = [1, 1]} : vector<8x32xf32> to vector<1x32xf32>
    %18 = arith.addf %16, %17 : vector<1x32xf32>
    %c0_15 = arith.constant 0 : index
    %c0_16 = arith.constant 0 : index
    %19 = vector.load %arg13[%c0_15, %c0_16] : memref<16x32xf32, #tpu.memory_space<vmem>>, vector<1x32xf32>
    tpu.vector_store %arg13[%c0_15, %c0_16], %18 {strides = array<i32>} : memref<16x32xf32, #tpu.memory_space<vmem>>, vector<1x32xf32>,
    %20 = vector.extract_strided_slice %15 {offsets = [0, 0], sizes = [7, 32], strides = [1, 1]} : vector<14x32xf32> to vector<7x32xf32>
    %21 = vector.extract_strided_slice %0 {offsets = [1, 0], sizes = [7, 32], strides = [1, 1]} : vector<8x32xf32> to vector<7x32xf32>
    %22 = arith.addf %20, %21 : vector<7x32xf32>
    %c1 = arith.constant 1 : index
    %c0_17 = arith.constant 0 : index
    %23 = vector.load %arg13[%c1, %c0_17] : memref<16x32xf32, #tpu.memory_space<vmem>>, vector<7x32xf32>
    tpu.vector_store %arg13[%c1, %c0_17], %22 {strides = array<i32>} : memref<16x32xf32, #tpu.memory_space<vmem>>, vector<7x32xf32>,
    %24 = vector.extract_strided_slice %10 {offsets = [1, 0], sizes = [1, 32], strides = [1, 1]} : vector<2x32xf32> to vector<1x32xf32>
    %25 = vector.extract_strided_slice %0 {offsets = [0, 0], sizes = [1, 32], strides = [1, 1]} : vector<8x32xf32> to vector<1x32xf32>
    %26 = arith.addf %24, %25 : vector<1x32xf32>
    %c8_18 = arith.constant 8 : index
    %c0_19 = arith.constant 0 : index
    %27 = vector.load %arg13[%c8_18, %c0_19] : memref<16x32xf32, #tpu.memory_space<vmem>>, vector<1x32xf32>
    tpu.vector_store %arg13[%c8_18, %c0_19], %26 {strides = array<i32>} : memref<16x32xf32, #tpu.memory_space<vmem>>, vector<1x32xf32>,
    %28 = vector.extract_strided_slice %15 {offsets = [7, 0], sizes = [7, 32], strides = [1, 1]} : vector<14x32xf32> to vector<7x32xf32>
    %29 = vector.extract_strided_slice %0 {offsets = [1, 0], sizes = [7, 32], strides = [1, 1]} : vector<8x32xf32> to vector<7x32xf32>
    %30 = arith.addf %28, %29 : vector<7x32xf32>
    %c9_20 = arith.constant 9 : index
    %c0_21 = arith.constant 0 : index
    %31 = vector.load %arg13[%c9_20, %c0_21] : memref<16x32xf32, #tpu.memory_space<vmem>>, vector<7x32xf32>
    tpu.vector_store %arg13[%c9_20, %c0_21], %30 {strides = array<i32>} : memref<16x32xf32, #tpu.memory_space<vmem>>, vector<7x32xf32>,
    %c0_22 = arith.constant 0 : index
    %c0_23 = arith.constant 0 : index
    %c0_24 = arith.constant 0 : index
    %32 = vector.load %arg6[%c0_22, %c0_23, %c0_24] : memref<2x32x96xf32, #tpu.memory_space<vmem>>, vector<1x32x96xf32>
    %33 = vector.shape_cast %32 : vector<1x32x96xf32> to vector<32x96xf32>
    %c0_25 = arith.constant 0 : index
    %c0_26 = arith.constant 0 : index
    %c0_27 = arith.constant 0 : index
    %34 = vector.load %arg7[%c0_25, %c0_26, %c0_27] : memref<2x32x32xf32, #tpu.memory_space<vmem>>, vector<1x32x32xf32>
    %35 = vector.shape_cast %34 : vector<1x32x32xf32> to vector<32x32xf32>
    %c0_28 = arith.constant 0 : index
    %c0_29 = arith.constant 0 : index
    %c0_30 = arith.constant 0 : index
    %36 = vector.load %arg8[%c0_28, %c0_29, %c0_30] : memref<2x32x64xf32, #tpu.memory_space<vmem>>, vector<1x32x64xf32>
    %37 = vector.shape_cast %36 : vector<1x32x64xf32> to vector<32x64xf32>
    %c0_31 = arith.constant 0 : index
    %c0_32 = arith.constant 0 : index
    %c0_33 = arith.constant 0 : index
    %38 = vector.load %arg9[%c0_31, %c0_32, %c0_33] : memref<2x64x32xf32, #tpu.memory_space<vmem>>, vector<1x64x32xf32>
    %39 = vector.shape_cast %38 : vector<1x64x32xf32> to vector<64x32xf32>
    %c0_34 = arith.constant 0 : index
    %c0_35 = arith.constant 0 : index
    %c0_36 = arith.constant 0 : index
    %40 = vector.load %arg10[%c0_34, %c0_35, %c0_36] : memref<2x8x96xf32, #tpu.memory_space<vmem>>, vector<1x8x96xf32>
    %41 = vector.shape_cast %40 : vector<1x8x96xf32> to vector<8x96xf32>
    %42 = vector.extract_strided_slice %41 {offsets = [0, 0], sizes = [1, 96], strides = [1, 1]} : vector<8x96xf32> to vector<1x96xf32>
    %43 = vector.extract_strided_slice %41 {offsets = [1, 0], sizes = [1, 32], strides = [1, 1]} : vector<8x96xf32> to vector<1x32xf32>
    %44 = vector.extract_strided_slice %41 {offsets = [2, 0], sizes = [1, 64], strides = [1, 1]} : vector<8x96xf32> to vector<1x64xf32>
    %45 = vector.extract_strided_slice %41 {offsets = [3, 0], sizes = [1, 32], strides = [1, 1]} : vector<8x96xf32> to vector<1x32xf32>
    %46 = vector.extract_strided_slice %41 {offsets = [4, 0], sizes = [1, 32], strides = [1, 1]} : vector<8x96xf32> to vector<1x32xf32>
    %47 = vector.extract_strided_slice %41 {offsets = [5, 0], sizes = [1, 32], strides = [1, 1]} : vector<8x96xf32> to vector<1x32xf32>
    %48 = vector.extract_strided_slice %41 {offsets = [6, 0], sizes = [1, 32], strides = [1, 1]} : vector<8x96xf32> to vector<1x32xf32>
    %49 = vector.extract_strided_slice %41 {offsets = [7, 0], sizes = [1, 32], strides = [1, 1]} : vector<8x96xf32> to vector<1x32xf32>
    %c0_37 = arith.constant 0 : index
    %c0_38 = arith.constant 0 : index
    %50 = vector.load %arg13[%c0_37, %c0_38] : memref<16x32xf32, #tpu.memory_space<vmem>>, vector<16x32xf32>
    %cst_39 = arith.constant dense<0.000000e+00> : vector<16x96xf32>
    %51 = tpu.matmul %50, %33, %cst_39 {dimension_numbers = #tpu.dot_dimension_numbers<[1], [0], [0], [1], [0, 0, 1, 1], [], []>} : vector<16x32xf32>, vector<32x96xf32>, vector<16x96xf32> -> vector<16x96xf32>
    %52 = vector.broadcast %42 : vector<1x96xf32> to vector<16x96xf32>
    %53 = arith.addf %51, %52 : vector<16x96xf32>
    %54 = vector.extract_strided_slice %53 {offsets = [0, 0], sizes = [16, 32], strides = [1, 1]} : vector<16x96xf32> to vector<16x32xf32>
    %cst_40 = arith.constant 2.500000e-01 : f32
    %55 = vector.broadcast %cst_40 : f32 to vector<16x32xf32>
    %56 = arith.mulf %54, %55 : vector<16x32xf32>
    %57 = vector.extract_strided_slice %53 {offsets = [0, 32], sizes = [16, 32], strides = [1, 1]} : vector<16x96xf32> to vector<16x32xf32>
    %58 = vector.extract_strided_slice %53 {offsets = [0, 64], sizes = [16, 32], strides = [1, 1]} : vector<16x96xf32> to vector<16x32xf32>
    %59 = vector.extract_strided_slice %56 {offsets = [0, 0], sizes = [8, 16], strides = [1, 1]} : vector<16x32xf32> to vector<8x16xf32>
    %60 = vector.extract_strided_slice %57 {offsets = [0, 0], sizes = [8, 16], strides = [1, 1]} : vector<16x32xf32> to vector<8x16xf32>
    %cst_41 = arith.constant dense<0.000000e+00> : vector<8x8xf32>
    %61 = tpu.matmul %59, %60, %cst_41 {dimension_numbers = #tpu.dot_dimension_numbers<[1], [1], [0], [0], [0, 0, 1, 0], [], []>} : vector<8x16xf32>, vector<8x16xf32>, vector<8x8xf32> -> vector<8x8xf32>
    %cst_42 = arith.constant dense<0xFF800000> : vector<8xf32>
    %62 = vector.multi_reduction <maximumf>, %61, %cst_42 [1] : vector<8x8xf32> to vector<8xf32>
    %63 = vector.shape_cast %62 : vector<8xf32> to vector<8x1xf32>
    %64 = vector.broadcast %63 : vector<8x1xf32> to vector<8x8xf32>
    %65 = arith.subf %61, %64 : vector<8x8xf32>
    %66 = math.exp %65 : vector<8x8xf32>
    %cst_43 = arith.constant dense<0.000000e+00> : vector<8xf32>
    %67 = vector.multi_reduction <add>, %66, %cst_43 [1] : vector<8x8xf32> to vector<8xf32>
    %68 = vector.shape_cast %67 : vector<8xf32> to vector<8x1xf32>
    %69 = vector.broadcast %68 : vector<8x1xf32> to vector<8x8xf32>
    %70 = arith.divf %66, %69 : vector<8x8xf32>
    %71 = vector.extract_strided_slice %58 {offsets = [0, 0], sizes = [8, 16], strides = [1, 1]} : vector<16x32xf32> to vector<8x16xf32>
    %cst_44 = arith.constant dense<0.000000e+00> : vector<8x16xf32>
    %72 = tpu.matmul %70, %71, %cst_44 {dimension_numbers = #tpu.dot_dimension_numbers<[1], [0], [0], [1], [0, 0, 1, 1], [], []>} : vector<8x8xf32>, vector<8x16xf32>, vector<8x16xf32> -> vector<8x16xf32>
    %c0_45 = arith.constant 0 : index
    %c0_46 = arith.constant 0 : index
    %73 = vector.load %arg14[%c0_45, %c0_46] : memref<16x32xf32, #tpu.memory_space<vmem>>, vector<8x16xf32>
    tpu.vector_store %arg14[%c0_45, %c0_46], %72 {strides = array<i32>} : memref<16x32xf32, #tpu.memory_space<vmem>>, vector<8x16xf32>,
    %74 = vector.extract_strided_slice %56 {offsets = [0, 16], sizes = [8, 16], strides = [1, 1]} : vector<16x32xf32> to vector<8x16xf32>
    %75 = vector.extract_strided_slice %57 {offsets = [0, 16], sizes = [8, 16], strides = [1, 1]} : vector<16x32xf32> to vector<8x16xf32>
    %cst_47 = arith.constant dense<0.000000e+00> : vector<8x8xf32>
    %76 = tpu.matmul %74, %75, %cst_47 {dimension_numbers = #tpu.dot_dimension_numbers<[1], [1], [0], [0], [0, 0, 1, 0], [], []>} : vector<8x16xf32>, vector<8x16xf32>, vector<8x8xf32> -> vector<8x8xf32>
    %cst_48 = arith.constant dense<0xFF800000> : vector<8xf32>
    %77 = vector.multi_reduction <maximumf>, %76, %cst_48 [1] : vector<8x8xf32> to vector<8xf32>
    %78 = vector.shape_cast %77 : vector<8xf32> to vector<8x1xf32>
    %79 = vector.broadcast %78 : vector<8x1xf32> to vector<8x8xf32>
    %80 = arith.subf %76, %79 : vector<8x8xf32>
    %81 = math.exp %80 : vector<8x8xf32>
    %cst_49 = arith.constant dense<0.000000e+00> : vector<8xf32>
    %82 = vector.multi_reduction <add>, %81, %cst_49 [1] : vector<8x8xf32> to vector<8xf32>
    %83 = vector.shape_cast %82 : vector<8xf32> to vector<8x1xf32>
    %84 = vector.broadcast %83 : vector<8x1xf32> to vector<8x8xf32>
    %85 = arith.divf %81, %84 : vector<8x8xf32>
    %86 = vector.extract_strided_slice %58 {offsets = [0, 16], sizes = [8, 16], strides = [1, 1]} : vector<16x32xf32> to vector<8x16xf32>
    %cst_50 = arith.constant dense<0.000000e+00> : vector<8x16xf32>
    %87 = tpu.matmul %85, %86, %cst_50 {dimension_numbers = #tpu.dot_dimension_numbers<[1], [0], [0], [1], [0, 0, 1, 1], [], []>} : vector<8x8xf32>, vector<8x16xf32>, vector<8x16xf32> -> vector<8x16xf32>
    %c0_51 = arith.constant 0 : index
    %c16 = arith.constant 16 : index
    %88 = vector.load %arg14[%c0_51, %c16] : memref<16x32xf32, #tpu.memory_space<vmem>>, vector<8x16xf32>
    tpu.vector_store %arg14[%c0_51, %c16], %87 {strides = array<i32>} : memref<16x32xf32, #tpu.memory_space<vmem>>, vector<8x16xf32>,
    %89 = vector.extract_strided_slice %56 {offsets = [8, 0], sizes = [8, 16], strides = [1, 1]} : vector<16x32xf32> to vector<8x16xf32>
    %90 = vector.extract_strided_slice %57 {offsets = [8, 0], sizes = [8, 16], strides = [1, 1]} : vector<16x32xf32> to vector<8x16xf32>
    %cst_52 = arith.constant dense<0.000000e+00> : vector<8x8xf32>
    %91 = tpu.matmul %89, %90, %cst_52 {dimension_numbers = #tpu.dot_dimension_numbers<[1], [1], [0], [0], [0, 0, 1, 0], [], []>} : vector<8x16xf32>, vector<8x16xf32>, vector<8x8xf32> -> vector<8x8xf32>
    %cst_53 = arith.constant dense<0xFF800000> : vector<8xf32>
    %92 = vector.multi_reduction <maximumf>, %91, %cst_53 [1] : vector<8x8xf32> to vector<8xf32>
    %93 = vector.shape_cast %92 : vector<8xf32> to vector<8x1xf32>
    %94 = vector.broadcast %93 : vector<8x1xf32> to vector<8x8xf32>
    %95 = arith.subf %91, %94 : vector<8x8xf32>
    %96 = math.exp %95 : vector<8x8xf32>
    %cst_54 = arith.constant dense<0.000000e+00> : vector<8xf32>
    %97 = vector.multi_reduction <add>, %96, %cst_54 [1] : vector<8x8xf32> to vector<8xf32>
    %98 = vector.shape_cast %97 : vector<8xf32> to vector<8x1xf32>
    %99 = vector.broadcast %98 : vector<8x1xf32> to vector<8x8xf32>
    %100 = arith.divf %96, %99 : vector<8x8xf32>
    %101 = vector.extract_strided_slice %58 {offsets = [8, 0], sizes = [8, 16], strides = [1, 1]} : vector<16x32xf32> to vector<8x16xf32>
    %cst_55 = arith.constant dense<0.000000e+00> : vector<8x16xf32>
    %102 = tpu.matmul %100, %101, %cst_55 {dimension_numbers = #tpu.dot_dimension_numbers<[1], [0], [0], [1], [0, 0, 1, 1], [], []>} : vector<8x8xf32>, vector<8x16xf32>, vector<8x16xf32> -> vector<8x16xf32>
    %c8_56 = arith.constant 8 : index
    %c0_57 = arith.constant 0 : index
    %103 = vector.load %arg14[%c8_56, %c0_57] : memref<16x32xf32, #tpu.memory_space<vmem>>, vector<8x16xf32>
    tpu.vector_store %arg14[%c8_56, %c0_57], %102 {strides = array<i32>} : memref<16x32xf32, #tpu.memory_space<vmem>>, vector<8x16xf32>,
    %104 = vector.extract_strided_slice %56 {offsets = [8, 16], sizes = [8, 16], strides = [1, 1]} : vector<16x32xf32> to vector<8x16xf32>
    %105 = vector.extract_strided_slice %57 {offsets = [8, 16], sizes = [8, 16], strides = [1, 1]} : vector<16x32xf32> to vector<8x16xf32>
    %cst_58 = arith.constant dense<0.000000e+00> : vector<8x8xf32>
    %106 = tpu.matmul %104, %105, %cst_58 {dimension_numbers = #tpu.dot_dimension_numbers<[1], [1], [0], [0], [0, 0, 1, 0], [], []>} : vector<8x16xf32>, vector<8x16xf32>, vector<8x8xf32> -> vector<8x8xf32>
    %cst_59 = arith.constant dense<0xFF800000> : vector<8xf32>
    %107 = vector.multi_reduction <maximumf>, %106, %cst_59 [1] : vector<8x8xf32> to vector<8xf32>
    %108 = vector.shape_cast %107 : vector<8xf32> to vector<8x1xf32>
    %109 = vector.broadcast %108 : vector<8x1xf32> to vector<8x8xf32>
    %110 = arith.subf %106, %109 : vector<8x8xf32>
    %111 = math.exp %110 : vector<8x8xf32>
    %cst_60 = arith.constant dense<0.000000e+00> : vector<8xf32>
    %112 = vector.multi_reduction <add>, %111, %cst_60 [1] : vector<8x8xf32> to vector<8xf32>
    %113 = vector.shape_cast %112 : vector<8xf32> to vector<8x1xf32>
    %114 = vector.broadcast %113 : vector<8x1xf32> to vector<8x8xf32>
    %115 = arith.divf %111, %114 : vector<8x8xf32>
    %116 = vector.extract_strided_slice %58 {offsets = [8, 16], sizes = [8, 16], strides = [1, 1]} : vector<16x32xf32> to vector<8x16xf32>
    %cst_61 = arith.constant dense<0.000000e+00> : vector<8x16xf32>
    %117 = tpu.matmul %115, %116, %cst_61 {dimension_numbers = #tpu.dot_dimension_numbers<[1], [0], [0], [1], [0, 0, 1, 1], [], []>} : vector<8x8xf32>, vector<8x16xf32>, vector<8x16xf32> -> vector<8x16xf32>
    %c8_62 = arith.constant 8 : index
    %c16_63 = arith.constant 16 : index
    %118 = vector.load %arg14[%c8_62, %c16_63] : memref<16x32xf32, #tpu.memory_space<vmem>>, vector<8x16xf32>
    tpu.vector_store %arg14[%c8_62, %c16_63], %117 {strides = array<i32>} : memref<16x32xf32, #tpu.memory_space<vmem>>, vector<8x16xf32>,
    %c0_64 = arith.constant 0 : index
    %c0_65 = arith.constant 0 : index
    %119 = vector.load %arg14[%c0_64, %c0_65] : memref<16x32xf32, #tpu.memory_space<vmem>>, vector<16x32xf32>
    %cst_66 = arith.constant dense<0.000000e+00> : vector<16x32xf32>
    %120 = tpu.matmul %119, %35, %cst_66 {dimension_numbers = #tpu.dot_dimension_numbers<[1], [0], [0], [1], [0, 0, 1, 1], [], []>} : vector<16x32xf32>, vector<32x32xf32>, vector<16x32xf32> -> vector<16x32xf32>
    %121 = vector.broadcast %43 : vector<1x32xf32> to vector<16x32xf32>
    %122 = arith.addf %120, %121 : vector<16x32xf32>
    %123 = arith.addf %50, %122 : vector<16x32xf32>
    %cst_67 = arith.constant dense<0.000000e+00> : vector<16xf32>
    %124 = vector.multi_reduction <add>, %123, %cst_67 [1] : vector<16x32xf32> to vector<16xf32>
    %125 = vector.shape_cast %124 : vector<16xf32> to vector<16x1xf32>
    %cst_68 = arith.constant 3.200000e+01 : f32
    %126 = vector.broadcast %cst_68 : f32 to vector<16x1xf32>
    %127 = arith.divf %125, %126 : vector<16x1xf32>
    %128 = vector.broadcast %127 : vector<16x1xf32> to vector<16x32xf32>
    %129 = arith.subf %123, %128 : vector<16x32xf32>
    %130 = arith.mulf %129, %129 : vector<16x32xf32>
    %cst_69 = arith.constant dense<0.000000e+00> : vector<16xf32>
    %131 = vector.multi_reduction <add>, %130, %cst_69 [1] : vector<16x32xf32> to vector<16xf32>
    %132 = vector.shape_cast %131 : vector<16xf32> to vector<16x1xf32>
    %cst_70 = arith.constant 3.200000e+01 : f32
    %133 = vector.broadcast %cst_70 : f32 to vector<16x1xf32>
    %134 = arith.divf %132, %133 : vector<16x1xf32>
    %135 = vector.broadcast %127 : vector<16x1xf32> to vector<16x32xf32>
    %136 = arith.subf %123, %135 : vector<16x32xf32>
    %cst_71 = arith.constant 9.99999974E-6 : f32
    %137 = vector.broadcast %cst_71 : f32 to vector<16x1xf32>
    %138 = arith.addf %134, %137 : vector<16x1xf32>
    %139 = math.rsqrt %138 : vector<16x1xf32>
    %140 = vector.broadcast %139 : vector<16x1xf32> to vector<16x32xf32>
    %141 = arith.mulf %136, %140 : vector<16x32xf32>
    %142 = vector.broadcast %46 : vector<1x32xf32> to vector<16x32xf32>
    %143 = arith.mulf %141, %142 : vector<16x32xf32>
    %144 = vector.broadcast %47 : vector<1x32xf32> to vector<16x32xf32>
    %145 = arith.addf %143, %144 : vector<16x32xf32>
    %cst_72 = arith.constant dense<0.000000e+00> : vector<16x64xf32>
    %146 = tpu.matmul %145, %37, %cst_72 {dimension_numbers = #tpu.dot_dimension_numbers<[1], [0], [0], [1], [0, 0, 1, 1], [], []>} : vector<16x32xf32>, vector<32x64xf32>, vector<16x64xf32> -> vector<16x64xf32>
    %147 = vector.broadcast %44 : vector<1x64xf32> to vector<16x64xf32>
    %148 = arith.addf %146, %147 : vector<16x64xf32>
    %cst_73 = arith.constant 0.000000e+00 : f32
    %149 = vector.broadcast %cst_73 : f32 to vector<16x64xf32>
    %150 = arith.maximumf %148, %149 : vector<16x64xf32>
    %cst_74 = arith.constant dense<0.000000e+00> : vector<16x32xf32>
    %151 = tpu.matmul %150, %39, %cst_74 {dimension_numbers = #tpu.dot_dimension_numbers<[1], [0], [0], [1], [0, 0, 1, 1], [], []>} : vector<16x64xf32>, vector<64x32xf32>, vector<16x32xf32> -> vector<16x32xf32>
    %152 = vector.broadcast %45 : vector<1x32xf32> to vector<16x32xf32>
    %153 = arith.addf %151, %152 : vector<16x32xf32>
    %154 = arith.addf %145, %153 : vector<16x32xf32>
    %cst_75 = arith.constant dense<0.000000e+00> : vector<16xf32>
    %155 = vector.multi_reduction <add>, %154, %cst_75 [1] : vector<16x32xf32> to vector<16xf32>
    %156 = vector.shape_cast %155 : vector<16xf32> to vector<16x1xf32>
    %cst_76 = arith.constant 3.200000e+01 : f32
    %157 = vector.broadcast %cst_76 : f32 to vector<16x1xf32>
    %158 = arith.divf %156, %157 : vector<16x1xf32>
    %159 = vector.broadcast %158 : vector<16x1xf32> to vector<16x32xf32>
    %160 = arith.subf %154, %159 : vector<16x32xf32>
    %161 = arith.mulf %160, %160 : vector<16x32xf32>
    %cst_77 = arith.constant dense<0.000000e+00> : vector<16xf32>
    %162 = vector.multi_reduction <add>, %161, %cst_77 [1] : vector<16x32xf32> to vector<16xf32>
    %163 = vector.shape_cast %162 : vector<16xf32> to vector<16x1xf32>
    %cst_78 = arith.constant 3.200000e+01 : f32
    %164 = vector.broadcast %cst_78 : f32 to vector<16x1xf32>
    %165 = arith.divf %163, %164 : vector<16x1xf32>
    %166 = vector.broadcast %158 : vector<16x1xf32> to vector<16x32xf32>
    %167 = arith.subf %154, %166 : vector<16x32xf32>
    %cst_79 = arith.constant 9.99999974E-6 : f32
    %168 = vector.broadcast %cst_79 : f32 to vector<16x1xf32>
    %169 = arith.addf %165, %168 : vector<16x1xf32>
    %170 = math.rsqrt %169 : vector<16x1xf32>
    %171 = vector.broadcast %170 : vector<16x1xf32> to vector<16x32xf32>
    %172 = arith.mulf %167, %171 : vector<16x32xf32>
    %173 = vector.broadcast %48 : vector<1x32xf32> to vector<16x32xf32>
    %174 = arith.mulf %172, %173 : vector<16x32xf32>
    %175 = vector.broadcast %49 : vector<1x32xf32> to vector<16x32xf32>
    %176 = arith.addf %174, %175 : vector<16x32xf32>
    %c0_80 = arith.constant 0 : index
    %c0_81 = arith.constant 0 : index
    %177 = vector.load %arg13[%c0_80, %c0_81] : memref<16x32xf32, #tpu.memory_space<vmem>>, vector<16x32xf32>
    tpu.vector_store %arg13[%c0_80, %c0_81], %176 {strides = array<i32>} : memref<16x32xf32, #tpu.memory_space<vmem>>, vector<16x32xf32>,
    %c1_82 = arith.constant 1 : index
    %c0_83 = arith.constant 0 : index
    %c0_84 = arith.constant 0 : index
    %178 = vector.load %arg6[%c1_82, %c0_83, %c0_84] : memref<2x32x96xf32, #tpu.memory_space<vmem>>, vector<1x32x96xf32>
    %179 = vector.shape_cast %178 : vector<1x32x96xf32> to vector<32x96xf32>
    %c1_85 = arith.constant 1 : index
    %c0_86 = arith.constant 0 : index
    %c0_87 = arith.constant 0 : index
    %180 = vector.load %arg7[%c1_85, %c0_86, %c0_87] : memref<2x32x32xf32, #tpu.memory_space<vmem>>, vector<1x32x32xf32>
    %181 = vector.shape_cast %180 : vector<1x32x32xf32> to vector<32x32xf32>
    %c1_88 = arith.constant 1 : index
    %c0_89 = arith.constant 0 : index
    %c0_90 = arith.constant 0 : index
    %182 = vector.load %arg8[%c1_88, %c0_89, %c0_90] : memref<2x32x64xf32, #tpu.memory_space<vmem>>, vector<1x32x64xf32>
    %183 = vector.shape_cast %182 : vector<1x32x64xf32> to vector<32x64xf32>
    %c1_91 = arith.constant 1 : index
    %c0_92 = arith.constant 0 : index
    %c0_93 = arith.constant 0 : index
    %184 = vector.load %arg9[%c1_91, %c0_92, %c0_93] : memref<2x64x32xf32, #tpu.memory_space<vmem>>, vector<1x64x32xf32>
    %185 = vector.shape_cast %184 : vector<1x64x32xf32> to vector<64x32xf32>
    %c1_94 = arith.constant 1 : index
    %c0_95 = arith.constant 0 : index
    %c0_96 = arith.constant 0 : index
    %186 = vector.load %arg10[%c1_94, %c0_95, %c0_96] : memref<2x8x96xf32, #tpu.memory_space<vmem>>, vector<1x8x96xf32>
    %187 = vector.shape_cast %186 : vector<1x8x96xf32> to vector<8x96xf32>
    %188 = vector.extract_strided_slice %187 {offsets = [0, 0], sizes = [1, 96], strides = [1, 1]} : vector<8x96xf32> to vector<1x96xf32>
    %189 = vector.extract_strided_slice %187 {offsets = [1, 0], sizes = [1, 32], strides = [1, 1]} : vector<8x96xf32> to vector<1x32xf32>
    %190 = vector.extract_strided_slice %187 {offsets = [2, 0], sizes = [1, 64], strides = [1, 1]} : vector<8x96xf32> to vector<1x64xf32>
    %191 = vector.extract_strided_slice %187 {offsets = [3, 0], sizes = [1, 32], strides = [1, 1]} : vector<8x96xf32> to vector<1x32xf32>
    %192 = vector.extract_strided_slice %187 {offsets = [4, 0], sizes = [1, 32], strides = [1, 1]} : vector<8x96xf32> to vector<1x32xf32>
    %193 = vector.extract_strided_slice %187 {offsets = [5, 0], sizes = [1, 32], strides = [1, 1]} : vector<8x96xf32> to vector<1x32xf32>
    %194 = vector.extract_strided_slice %187 {offsets = [6, 0], sizes = [1, 32], strides = [1, 1]} : vector<8x96xf32> to vector<1x32xf32>
    %195 = vector.extract_strided_slice %187 {offsets = [7, 0], sizes = [1, 32], strides = [1, 1]} : vector<8x96xf32> to vector<1x32xf32>
    %c0_97 = arith.constant 0 : index
    %c0_98 = arith.constant 0 : index
    %196 = vector.load %arg13[%c0_97, %c0_98] : memref<16x32xf32, #tpu.memory_space<vmem>>, vector<16x32xf32>
    %cst_99 = arith.constant dense<0.000000e+00> : vector<16x96xf32>
    %197 = tpu.matmul %196, %179, %cst_99 {dimension_numbers = #tpu.dot_dimension_numbers<[1], [0], [0], [1], [0, 0, 1, 1], [], []>} : vector<16x32xf32>, vector<32x96xf32>, vector<16x96xf32> -> vector<16x96xf32>
    %198 = vector.broadcast %188 : vector<1x96xf32> to vector<16x96xf32>
    %199 = arith.addf %197, %198 : vector<16x96xf32>
    %200 = vector.extract_strided_slice %199 {offsets = [0, 0], sizes = [16, 32], strides = [1, 1]} : vector<16x96xf32> to vector<16x32xf32>
    %cst_100 = arith.constant 2.500000e-01 : f32
    %201 = vector.broadcast %cst_100 : f32 to vector<16x32xf32>
    %202 = arith.mulf %200, %201 : vector<16x32xf32>
    %203 = vector.extract_strided_slice %199 {offsets = [0, 32], sizes = [16, 32], strides = [1, 1]} : vector<16x96xf32> to vector<16x32xf32>
    %204 = vector.extract_strided_slice %199 {offsets = [0, 64], sizes = [16, 32], strides = [1, 1]} : vector<16x96xf32> to vector<16x32xf32>
    %205 = vector.extract_strided_slice %202 {offsets = [0, 0], sizes = [8, 16], strides = [1, 1]} : vector<16x32xf32> to vector<8x16xf32>
    %206 = vector.extract_strided_slice %203 {offsets = [0, 0], sizes = [8, 16], strides = [1, 1]} : vector<16x32xf32> to vector<8x16xf32>
    %cst_101 = arith.constant dense<0.000000e+00> : vector<8x8xf32>
    %207 = tpu.matmul %205, %206, %cst_101 {dimension_numbers = #tpu.dot_dimension_numbers<[1], [1], [0], [0], [0, 0, 1, 0], [], []>} : vector<8x16xf32>, vector<8x16xf32>, vector<8x8xf32> -> vector<8x8xf32>
    %cst_102 = arith.constant dense<0xFF800000> : vector<8xf32>
    %208 = vector.multi_reduction <maximumf>, %207, %cst_102 [1] : vector<8x8xf32> to vector<8xf32>
    %209 = vector.shape_cast %208 : vector<8xf32> to vector<8x1xf32>
    %210 = vector.broadcast %209 : vector<8x1xf32> to vector<8x8xf32>
    %211 = arith.subf %207, %210 : vector<8x8xf32>
    %212 = math.exp %211 : vector<8x8xf32>
    %cst_103 = arith.constant dense<0.000000e+00> : vector<8xf32>
    %213 = vector.multi_reduction <add>, %212, %cst_103 [1] : vector<8x8xf32> to vector<8xf32>
    %214 = vector.shape_cast %213 : vector<8xf32> to vector<8x1xf32>
    %215 = vector.broadcast %214 : vector<8x1xf32> to vector<8x8xf32>
    %216 = arith.divf %212, %215 : vector<8x8xf32>
    %217 = vector.extract_strided_slice %204 {offsets = [0, 0], sizes = [8, 16], strides = [1, 1]} : vector<16x32xf32> to vector<8x16xf32>
    %cst_104 = arith.constant dense<0.000000e+00> : vector<8x16xf32>
    %218 = tpu.matmul %216, %217, %cst_104 {dimension_numbers = #tpu.dot_dimension_numbers<[1], [0], [0], [1], [0, 0, 1, 1], [], []>} : vector<8x8xf32>, vector<8x16xf32>, vector<8x16xf32> -> vector<8x16xf32>
    %c0_105 = arith.constant 0 : index
    %c0_106 = arith.constant 0 : index
    %219 = vector.load %arg14[%c0_105, %c0_106] : memref<16x32xf32, #tpu.memory_space<vmem>>, vector<8x16xf32>
    tpu.vector_store %arg14[%c0_105, %c0_106], %218 {strides = array<i32>} : memref<16x32xf32, #tpu.memory_space<vmem>>, vector<8x16xf32>,
    %220 = vector.extract_strided_slice %202 {offsets = [0, 16], sizes = [8, 16], strides = [1, 1]} : vector<16x32xf32> to vector<8x16xf32>
    %221 = vector.extract_strided_slice %203 {offsets = [0, 16], sizes = [8, 16], strides = [1, 1]} : vector<16x32xf32> to vector<8x16xf32>
    %cst_107 = arith.constant dense<0.000000e+00> : vector<8x8xf32>
    %222 = tpu.matmul %220, %221, %cst_107 {dimension_numbers = #tpu.dot_dimension_numbers<[1], [1], [0], [0], [0, 0, 1, 0], [], []>} : vector<8x16xf32>, vector<8x16xf32>, vector<8x8xf32> -> vector<8x8xf32>
    %cst_108 = arith.constant dense<0xFF800000> : vector<8xf32>
    %223 = vector.multi_reduction <maximumf>, %222, %cst_108 [1] : vector<8x8xf32> to vector<8xf32>
    %224 = vector.shape_cast %223 : vector<8xf32> to vector<8x1xf32>
    %225 = vector.broadcast %224 : vector<8x1xf32> to vector<8x8xf32>
    %226 = arith.subf %222, %225 : vector<8x8xf32>
    %227 = math.exp %226 : vector<8x8xf32>
    %cst_109 = arith.constant dense<0.000000e+00> : vector<8xf32>
    %228 = vector.multi_reduction <add>, %227, %cst_109 [1] : vector<8x8xf32> to vector<8xf32>
    %229 = vector.shape_cast %228 : vector<8xf32> to vector<8x1xf32>
    %230 = vector.broadcast %229 : vector<8x1xf32> to vector<8x8xf32>
    %231 = arith.divf %227, %230 : vector<8x8xf32>
    %232 = vector.extract_strided_slice %204 {offsets = [0, 16], sizes = [8, 16], strides = [1, 1]} : vector<16x32xf32> to vector<8x16xf32>
    %cst_110 = arith.constant dense<0.000000e+00> : vector<8x16xf32>
    %233 = tpu.matmul %231, %232, %cst_110 {dimension_numbers = #tpu.dot_dimension_numbers<[1], [0], [0], [1], [0, 0, 1, 1], [], []>} : vector<8x8xf32>, vector<8x16xf32>, vector<8x16xf32> -> vector<8x16xf32>
    %c0_111 = arith.constant 0 : index
    %c16_112 = arith.constant 16 : index
    %234 = vector.load %arg14[%c0_111, %c16_112] : memref<16x32xf32, #tpu.memory_space<vmem>>, vector<8x16xf32>
    tpu.vector_store %arg14[%c0_111, %c16_112], %233 {strides = array<i32>} : memref<16x32xf32, #tpu.memory_space<vmem>>, vector<8x16xf32>,
    %235 = vector.extract_strided_slice %202 {offsets = [8, 0], sizes = [8, 16], strides = [1, 1]} : vector<16x32xf32> to vector<8x16xf32>
    %236 = vector.extract_strided_slice %203 {offsets = [8, 0], sizes = [8, 16], strides = [1, 1]} : vector<16x32xf32> to vector<8x16xf32>
    %cst_113 = arith.constant dense<0.000000e+00> : vector<8x8xf32>
    %237 = tpu.matmul %235, %236, %cst_113 {dimension_numbers = #tpu.dot_dimension_numbers<[1], [1], [0], [0], [0, 0, 1, 0], [], []>} : vector<8x16xf32>, vector<8x16xf32>, vector<8x8xf32> -> vector<8x8xf32>
    %cst_114 = arith.constant dense<0xFF800000> : vector<8xf32>
    %238 = vector.multi_reduction <maximumf>, %237, %cst_114 [1] : vector<8x8xf32> to vector<8xf32>
    %239 = vector.shape_cast %238 : vector<8xf32> to vector<8x1xf32>
    %240 = vector.broadcast %239 : vector<8x1xf32> to vector<8x8xf32>
    %241 = arith.subf %237, %240 : vector<8x8xf32>
    %242 = math.exp %241 : vector<8x8xf32>
    %cst_115 = arith.constant dense<0.000000e+00> : vector<8xf32>
    %243 = vector.multi_reduction <add>, %242, %cst_115 [1] : vector<8x8xf32> to vector<8xf32>
    %244 = vector.shape_cast %243 : vector<8xf32> to vector<8x1xf32>
    %245 = vector.broadcast %244 : vector<8x1xf32> to vector<8x8xf32>
    %246 = arith.divf %242, %245 : vector<8x8xf32>
    %247 = vector.extract_strided_slice %204 {offsets = [8, 0], sizes = [8, 16], strides = [1, 1]} : vector<16x32xf32> to vector<8x16xf32>
    %cst_116 = arith.constant dense<0.000000e+00> : vector<8x16xf32>
    %248 = tpu.matmul %246, %247, %cst_116 {dimension_numbers = #tpu.dot_dimension_numbers<[1], [0], [0], [1], [0, 0, 1, 1], [], []>} : vector<8x8xf32>, vector<8x16xf32>, vector<8x16xf32> -> vector<8x16xf32>
    %c8_117 = arith.constant 8 : index
    %c0_118 = arith.constant 0 : index
    %249 = vector.load %arg14[%c8_117, %c0_118] : memref<16x32xf32, #tpu.memory_space<vmem>>, vector<8x16xf32>
    tpu.vector_store %arg14[%c8_117, %c0_118], %248 {strides = array<i32>} : memref<16x32xf32, #tpu.memory_space<vmem>>, vector<8x16xf32>,
    %250 = vector.extract_strided_slice %202 {offsets = [8, 16], sizes = [8, 16], strides = [1, 1]} : vector<16x32xf32> to vector<8x16xf32>
    %251 = vector.extract_strided_slice %203 {offsets = [8, 16], sizes = [8, 16], strides = [1, 1]} : vector<16x32xf32> to vector<8x16xf32>
    %cst_119 = arith.constant dense<0.000000e+00> : vector<8x8xf32>
    %252 = tpu.matmul %250, %251, %cst_119 {dimension_numbers = #tpu.dot_dimension_numbers<[1], [1], [0], [0], [0, 0, 1, 0], [], []>} : vector<8x16xf32>, vector<8x16xf32>, vector<8x8xf32> -> vector<8x8xf32>
    %cst_120 = arith.constant dense<0xFF800000> : vector<8xf32>
    %253 = vector.multi_reduction <maximumf>, %252, %cst_120 [1] : vector<8x8xf32> to vector<8xf32>
    %254 = vector.shape_cast %253 : vector<8xf32> to vector<8x1xf32>
    %255 = vector.broadcast %254 : vector<8x1xf32> to vector<8x8xf32>
    %256 = arith.subf %252, %255 : vector<8x8xf32>
    %257 = math.exp %256 : vector<8x8xf32>
    %cst_121 = arith.constant dense<0.000000e+00> : vector<8xf32>
    %258 = vector.multi_reduction <add>, %257, %cst_121 [1] : vector<8x8xf32> to vector<8xf32>
    %259 = vector.shape_cast %258 : vector<8xf32> to vector<8x1xf32>
    %260 = vector.broadcast %259 : vector<8x1xf32> to vector<8x8xf32>
    %261 = arith.divf %257, %260 : vector<8x8xf32>
    %262 = vector.extract_strided_slice %204 {offsets = [8, 16], sizes = [8, 16], strides = [1, 1]} : vector<16x32xf32> to vector<8x16xf32>
    %cst_122 = arith.constant dense<0.000000e+00> : vector<8x16xf32>
    %263 = tpu.matmul %261, %262, %cst_122 {dimension_numbers = #tpu.dot_dimension_numbers<[1], [0], [0], [1], [0, 0, 1, 1], [], []>} : vector<8x8xf32>, vector<8x16xf32>, vector<8x16xf32> -> vector<8x16xf32>
    %c8_123 = arith.constant 8 : index
    %c16_124 = arith.constant 16 : index
    %264 = vector.load %arg14[%c8_123, %c16_124] : memref<16x32xf32, #tpu.memory_space<vmem>>, vector<8x16xf32>
    tpu.vector_store %arg14[%c8_123, %c16_124], %263 {strides = array<i32>} : memref<16x32xf32, #tpu.memory_space<vmem>>, vector<8x16xf32>,
    %c0_125 = arith.constant 0 : index
    %c0_126 = arith.constant 0 : index
    %265 = vector.load %arg14[%c0_125, %c0_126] : memref<16x32xf32, #tpu.memory_space<vmem>>, vector<16x32xf32>
    %cst_127 = arith.constant dense<0.000000e+00> : vector<16x32xf32>
    %266 = tpu.matmul %265, %181, %cst_127 {dimension_numbers = #tpu.dot_dimension_numbers<[1], [0], [0], [1], [0, 0, 1, 1], [], []>} : vector<16x32xf32>, vector<32x32xf32>, vector<16x32xf32> -> vector<16x32xf32>
    %267 = vector.broadcast %189 : vector<1x32xf32> to vector<16x32xf32>
    %268 = arith.addf %266, %267 : vector<16x32xf32>
    %269 = arith.addf %196, %268 : vector<16x32xf32>
    %cst_128 = arith.constant dense<0.000000e+00> : vector<16xf32>
    %270 = vector.multi_reduction <add>, %269, %cst_128 [1] : vector<16x32xf32> to vector<16xf32>
    %271 = vector.shape_cast %270 : vector<16xf32> to vector<16x1xf32>
    %cst_129 = arith.constant 3.200000e+01 : f32
    %272 = vector.broadcast %cst_129 : f32 to vector<16x1xf32>
    %273 = arith.divf %271, %272 : vector<16x1xf32>
    %274 = vector.broadcast %273 : vector<16x1xf32> to vector<16x32xf32>
    %275 = arith.subf %269, %274 : vector<16x32xf32>
    %276 = arith.mulf %275, %275 : vector<16x32xf32>
    %cst_130 = arith.constant dense<0.000000e+00> : vector<16xf32>
    %277 = vector.multi_reduction <add>, %276, %cst_130 [1] : vector<16x32xf32> to vector<16xf32>
    %278 = vector.shape_cast %277 : vector<16xf32> to vector<16x1xf32>
    %cst_131 = arith.constant 3.200000e+01 : f32
    %279 = vector.broadcast %cst_131 : f32 to vector<16x1xf32>
    %280 = arith.divf %278, %279 : vector<16x1xf32>
    %281 = vector.broadcast %273 : vector<16x1xf32> to vector<16x32xf32>
    %282 = arith.subf %269, %281 : vector<16x32xf32>
    %cst_132 = arith.constant 9.99999974E-6 : f32
    %283 = vector.broadcast %cst_132 : f32 to vector<16x1xf32>
    %284 = arith.addf %280, %283 : vector<16x1xf32>
    %285 = math.rsqrt %284 : vector<16x1xf32>
    %286 = vector.broadcast %285 : vector<16x1xf32> to vector<16x32xf32>
    %287 = arith.mulf %282, %286 : vector<16x32xf32>
    %288 = vector.broadcast %192 : vector<1x32xf32> to vector<16x32xf32>
    %289 = arith.mulf %287, %288 : vector<16x32xf32>
    %290 = vector.broadcast %193 : vector<1x32xf32> to vector<16x32xf32>
    %291 = arith.addf %289, %290 : vector<16x32xf32>
    %cst_133 = arith.constant dense<0.000000e+00> : vector<16x64xf32>
    %292 = tpu.matmul %291, %183, %cst_133 {dimension_numbers = #tpu.dot_dimension_numbers<[1], [0], [0], [1], [0, 0, 1, 1], [], []>} : vector<16x32xf32>, vector<32x64xf32>, vector<16x64xf32> -> vector<16x64xf32>
    %293 = vector.broadcast %190 : vector<1x64xf32> to vector<16x64xf32>
    %294 = arith.addf %292, %293 : vector<16x64xf32>
    %cst_134 = arith.constant 0.000000e+00 : f32
    %295 = vector.broadcast %cst_134 : f32 to vector<16x64xf32>
    %296 = arith.maximumf %294, %295 : vector<16x64xf32>
    %cst_135 = arith.constant dense<0.000000e+00> : vector<16x32xf32>
    %297 = tpu.matmul %296, %185, %cst_135 {dimension_numbers = #tpu.dot_dimension_numbers<[1], [0], [0], [1], [0, 0, 1, 1], [], []>} : vector<16x64xf32>, vector<64x32xf32>, vector<16x32xf32> -> vector<16x32xf32>
    %298 = vector.broadcast %191 : vector<1x32xf32> to vector<16x32xf32>
    %299 = arith.addf %297, %298 : vector<16x32xf32>
    %300 = arith.addf %291, %299 : vector<16x32xf32>
    %cst_136 = arith.constant dense<0.000000e+00> : vector<16xf32>
    %301 = vector.multi_reduction <add>, %300, %cst_136 [1] : vector<16x32xf32> to vector<16xf32>
    %302 = vector.shape_cast %301 : vector<16xf32> to vector<16x1xf32>
    %cst_137 = arith.constant 3.200000e+01 : f32
    %303 = vector.broadcast %cst_137 : f32 to vector<16x1xf32>
    %304 = arith.divf %302, %303 : vector<16x1xf32>
    %305 = vector.broadcast %304 : vector<16x1xf32> to vector<16x32xf32>
    %306 = arith.subf %300, %305 : vector<16x32xf32>
    %307 = arith.mulf %306, %306 : vector<16x32xf32>
    %cst_138 = arith.constant dense<0.000000e+00> : vector<16xf32>
    %308 = vector.multi_reduction <add>, %307, %cst_138 [1] : vector<16x32xf32> to vector<16xf32>
    %309 = vector.shape_cast %308 : vector<16xf32> to vector<16x1xf32>
    %cst_139 = arith.constant 3.200000e+01 : f32
    %310 = vector.broadcast %cst_139 : f32 to vector<16x1xf32>
    %311 = arith.divf %309, %310 : vector<16x1xf32>
    %312 = vector.broadcast %304 : vector<16x1xf32> to vector<16x32xf32>
    %313 = arith.subf %300, %312 : vector<16x32xf32>
    %cst_140 = arith.constant 9.99999974E-6 : f32
    %314 = vector.broadcast %cst_140 : f32 to vector<16x1xf32>
    %315 = arith.addf %311, %314 : vector<16x1xf32>
    %316 = math.rsqrt %315 : vector<16x1xf32>
    %317 = vector.broadcast %316 : vector<16x1xf32> to vector<16x32xf32>
    %318 = arith.mulf %313, %317 : vector<16x32xf32>
    %319 = vector.broadcast %194 : vector<1x32xf32> to vector<16x32xf32>
    %320 = arith.mulf %318, %319 : vector<16x32xf32>
    %321 = vector.broadcast %195 : vector<1x32xf32> to vector<16x32xf32>
    %322 = arith.addf %320, %321 : vector<16x32xf32>
    %c0_141 = arith.constant 0 : index
    %c0_142 = arith.constant 0 : index
    %323 = vector.load %arg13[%c0_141, %c0_142] : memref<16x32xf32, #tpu.memory_space<vmem>>, vector<16x32xf32>
    tpu.vector_store %arg13[%c0_141, %c0_142], %322 {strides = array<i32>} : memref<16x32xf32, #tpu.memory_space<vmem>>, vector<16x32xf32>,
    %c0_143 = arith.constant 0 : index
    %c0_144 = arith.constant 0 : index
    %324 = vector.load %arg13[%c0_143, %c0_144] : memref<16x32xf32, #tpu.memory_space<vmem>>, vector<1x32xf32>
    %c8_145 = arith.constant 8 : index
    %c0_146 = arith.constant 0 : index
    %325 = vector.load %arg13[%c8_145, %c0_146] : memref<16x32xf32, #tpu.memory_space<vmem>>, vector<1x32xf32>
    %326 = tpu.concatenate %324, %325 in 0 : vector<1x32xf32>, vector<1x32xf32> -> vector<2x32xf32>
    %cst_147 = arith.constant dense<0.000000e+00> : vector<2xf32>
    %327 = vector.multi_reduction <add>, %326, %cst_147 [1] : vector<2x32xf32> to vector<2xf32>
    %328 = vector.shape_cast %327 : vector<2xf32> to vector<2x1xf32>
    %cst_148 = arith.constant 3.200000e+01 : f32
    %329 = vector.broadcast %cst_148 : f32 to vector<2x1xf32>
    %330 = arith.divf %328, %329 : vector<2x1xf32>
    %331 = vector.broadcast %330 : vector<2x1xf32> to vector<2x32xf32>
    %332 = arith.subf %326, %331 : vector<2x32xf32>
    %333 = arith.mulf %332, %332 : vector<2x32xf32>
    %cst_149 = arith.constant dense<0.000000e+00> : vector<2xf32>
    %334 = vector.multi_reduction <add>, %333, %cst_149 [1] : vector<2x32xf32> to vector<2xf32>
    %335 = vector.shape_cast %334 : vector<2xf32> to vector<2x1xf32>
    %cst_150 = arith.constant 3.200000e+01 : f32
    %336 = vector.broadcast %cst_150 : f32 to vector<2x1xf32>
    %337 = arith.divf %335, %336 : vector<2x1xf32>
    %338 = vector.broadcast %330 : vector<2x1xf32> to vector<2x32xf32>
    %339 = arith.subf %326, %338 : vector<2x32xf32>
    %cst_151 = arith.constant 9.99999974E-6 : f32
    %340 = vector.broadcast %cst_151 : f32 to vector<2x1xf32>
    %341 = arith.addf %337, %340 : vector<2x1xf32>
    %342 = math.rsqrt %341 : vector<2x1xf32>
    %343 = vector.broadcast %342 : vector<2x1xf32> to vector<2x32xf32>
    %344 = arith.mulf %339, %343 : vector<2x32xf32>
    %345 = vector.broadcast %3 : vector<1x32xf32> to vector<2x32xf32>
    %346 = arith.mulf %344, %345 : vector<2x32xf32>
    %347 = vector.broadcast %4 : vector<1x32xf32> to vector<2x32xf32>
    %348 = arith.addf %346, %347 : vector<2x32xf32>
    %c0_152 = arith.constant 0 : index
    %c0_153 = arith.constant 0 : index
    %349 = vector.load %arg11[%c0_152, %c0_153] : memref<32x32xf32, #tpu.memory_space<vmem>>, vector<32x32xf32>
    %cst_154 = arith.constant dense<0.000000e+00> : vector<2x32xf32>
    %350 = tpu.matmul %348, %349, %cst_154 {dimension_numbers = #tpu.dot_dimension_numbers<[1], [0], [0], [1], [0, 0, 1, 1], [], []>} : vector<2x32xf32>, vector<32x32xf32>, vector<2x32xf32> -> vector<2x32xf32>
    %351 = vector.broadcast %5 : vector<1x32xf32> to vector<2x32xf32>
    %352 = arith.addf %350, %351 : vector<2x32xf32>
    %353 = vector.extract_strided_slice %352 {offsets = [0, 0], sizes = [2, 16], strides = [1, 1]} : vector<2x32xf32> to vector<2x16xf32>
    %354 = vector.extract_strided_slice %352 {offsets = [0, 16], sizes = [2, 16], strides = [1, 1]} : vector<2x32xf32> to vector<2x16xf32>
    %cst_155 = arith.constant 5.000000e-01 : f32
    %355 = vector.broadcast %cst_155 : f32 to vector<2x16xf32>
    %356 = arith.mulf %355, %354 : vector<2x16xf32>
    %357 = math.exp %356 : vector<2x16xf32>
    %c0_156 = arith.constant 0 : index
    %c0_157 = arith.constant 0 : index
    %358 = vector.load %arg2[%c0_156, %c0_157] : memref<2x16xf32, #tpu.memory_space<vmem>>, vector<2x16xf32>
    %359 = arith.mulf %357, %358 : vector<2x16xf32>
    %360 = arith.addf %353, %359 : vector<2x16xf32>
    %c0_158 = arith.constant 0 : index
    %c0_159 = arith.constant 0 : index
    %361 = vector.load %arg12[%c0_158, %c0_159] : memref<6x16xf32, #tpu.memory_space<vmem>>, vector<2x16xf32>
    tpu.vector_store %arg12[%c0_158, %c0_159], %360 {strides = array<i32>} : memref<6x16xf32, #tpu.memory_space<vmem>>, vector<2x16xf32>,
    %c2 = arith.constant 2 : index
    %c0_160 = arith.constant 0 : index
    %362 = vector.load %arg12[%c2, %c0_160] : memref<6x16xf32, #tpu.memory_space<vmem>>, vector<2x16xf32>
    tpu.vector_store %arg12[%c2, %c0_160], %353 {strides = array<i32>} : memref<6x16xf32, #tpu.memory_space<vmem>>, vector<2x16xf32>,
    %c4 = arith.constant 4 : index
    %c0_161 = arith.constant 0 : index
    %363 = vector.load %arg12[%c4, %c0_161] : memref<6x16xf32, #tpu.memory_space<vmem>>, vector<2x16xf32>
    tpu.vector_store %arg12[%c4, %c0_161], %354 {strides = array<i32>} : memref<6x16xf32, #tpu.memory_space<vmem>>, vector<2x16xf32>,
    return
  }
}

</mosaic_0001>

<bundles_post_ra>
// kernel: pose_encoder_forward.1
= control target key start
LH: loop header
LB: loop body
LE: loop exit
PB: predicated region body
PF: predicated region fallthrough
CT: control target
= control target key end

     0   :  { %17 = vsyncpa [#allocation5], 0  ;;  %s3789_s0 = inlined_call_operand.vmem [shape: f32[2,6], index: 0, kind: input, shape index: {}]   ;;  %s3790_s1 = inlined_call_operand.vmem [shape: f32[14,9], index: 1, kind: input, shape index: {}]   ;;  %s3791_s2 = inlined_call_operand.vmem [shape: f32[2,16], index: 2, kind: input, shape index: {}]   ;;  %s3792_s3 = inlined_call_operand.hbm [shape: f32[13,32], index: 3, kind: input, shape index: {}]   ;;  %s3793_s4 = inlined_call_operand.hbm [shape: f32[6,32], index: 4, kind: input, shape index: {}]   ;;  %s3794_s5 = inlined_call_operand.hbm [shape: f32[9,32], index: 5, kind: input, shape index: {}]   ;;  %s3795_s6 = inlined_call_operand.vmem [shape: f32[2,32,96], index: 6, kind: input, shape index: {}]   ;;  %s3796_s7 = inlined_call_operand.vmem [shape: f32[2,32,32], index: 7, kind: input, shape index: {}]   ;;  %s3797_s8 = inlined_call_operand.vmem [shape: f32[2,32,64], index: 8, kind: input, shape index: {}]   ;;  %s3798_s9 = inlined_call_operand.vmem [shape: f32[2,64,32], index: 9, kind: input, shape index: {}]   ;;  %s3799_s10 = inlined_call_operand.hbm [shape: f32[2,8,96], index: 10, kind: input, shape index: {}]   ;;  %s3800_s11 = inlined_call_operand.hbm [shape: f32[32,32], index: 11, kind: input, shape index: {}]   ;;  %s3801_s12 = inlined_call_operand.vmem [shape: f32[6,16], index: 12, kind: output, shape index: {}]  }
   0x1   :  { %18 = vsyncpa [#allocation7], 0 }
   0x2   :  { %19 = vsyncpa [#allocation10], 0  ;;  %s3260_s21 = smov [#allocation6]  }
   0x3   :  { %s44_s22 = sshll.u32 %s3260_s21, 4  ;;  %s45_s22 = int_to_ptr.vmem [resolvable:$true] %s44_s22 }
   0x4   :  { %s3162_s23 = scalar_lea.vmem %s45_s22, 128  ;;  %p3167_p1 = scmp.lt.s32.totalorder %s45_s22, %s45_s22 }
   0x5   :  { %p3163_p0 = scmp.ne.s32.totalorder %s45_s22, %s3162_s23  ;;  %p3168_p2 = scmp.lt.s32.totalorder %s3162_s23, %s3162_s23 }
   0x7   :  { %p3169_p3 = por %p3168_p2, %p3167_p1 }
   0x9   :  { %p3170_p4 = pnand %p3169_p3, %p3163_p0 }
   0xb   :  { %3173 = shalt.err (!%p3170_p4)
}
   0xc   :  { %47 = dma.hbm_to_vmem [thread:$0]  %s3793_s4, 128, %s45_s22, [#allocation7]  }
   0xd   :  { %s3261_s26 = smov [#allocation9]   ;;  %s3262_s28 = smov [#allocation4]  }
   0xe   :  { %s73_s27 = sshll.u32 %s3261_s26, 4  ;;  %s31_s29 = sshll.u32 %s3262_s28, 4  ;;  %s74_s27 = int_to_ptr.vmem [resolvable:$true] %s73_s27  ;;  %s32_s29 = int_to_ptr.vmem [resolvable:$true] %s31_s29 }
   0xf   :  { %s3182_s30 = scalar_lea.vmem %s74_s27, 256  ;;  %p3187_p6 = scmp.lt.s32.totalorder %s74_s27, %s74_s27 }
  0x10   :  { %p3183_p5 = scmp.ne.s32.totalorder %s74_s27, %s3182_s30  ;;  %p3188_p7 = scmp.lt.s32.totalorder %s3182_s30, %s3182_s30 }
  0x12   :  { %p3189_p8 = por %p3188_p7, %p3187_p6 }
  0x14   :  { %p3190_p9 = pnand %p3189_p8, %p3183_p5 }
  0x16   :  { %3193 = shalt.err (!%p3190_p9)
}
  0x17   :  { %s3263_s13 = smov 128   ;;  %s3264_s14 = smov 8  }
  0x18   :  { %79 = dma.hbm_to_vmem [thread:$0]  %s3799_s10, 256, %s74_s27, [#allocation10], %s3263_s13, %s3263_s13, %s3264_s14  }
  0x19   :  { %s3202_s4 = scalar_lea.vmem %s32_s29, 256  ;;  %p3207_p11 = scmp.lt.s32.totalorder %s32_s29, %s32_s29 }
  0x1a   :  { %p3203_p10 = scmp.ne.s32.totalorder %s32_s29, %s3202_s4  ;;  %p3208_p12 = scmp.lt.s32.totalorder %s3202_s4, %s3202_s4 }
  0x1c   :  { %p3209_p13 = por %p3208_p12, %p3207_p11 }
  0x1e   :  { %p3210_p0 = pnand %p3209_p13, %p3203_p10 }
  0x20   :  { %3213 = shalt.err (!%p3210_p0)
}
  0x21   :  { %37 = dma.hbm_to_vmem [thread:$0]  %s3792_s3, 256, %s32_s29, [#allocation5], %s3263_s13, %s3263_s13, %s3264_s14  }
  0x22   :  { %s3265_s19 = smov [#allocation8]   ;;  %s3266_s21 = smov [#allocation11]  }
  0x23   :  { %s53_s20 = sshll.u32 %s3265_s19, 4  ;;  %s85_s10 = sshll.u32 %s3266_s21, 4  ;;  %s54_s20 = int_to_ptr.vmem [resolvable:$true] %s53_s20  ;;  %s86_s10 = int_to_ptr.vmem [resolvable:$true] %s85_s10 }
  0x24   :  { %s3222_s22 = scalar_lea.vmem %s54_s20, 256  ;;  %p3227_p2 = scmp.lt.s32.totalorder %s54_s20, %s54_s20 }
  0x25   :  { %p3223_p1 = scmp.ne.s32.totalorder %s54_s20, %s3222_s22  ;;  %p3228_p3 = scmp.lt.s32.totalorder %s3222_s22, %s3222_s22 }
  0x27   :  { %p3229_p4 = por %p3228_p3, %p3227_p2 }
  0x29   :  { %p3230_p5 = pnand %p3229_p4, %p3223_p1 }
  0x2b   :  { %3233 = shalt.err (!%p3230_p5)
}
  0x2c   :  { %59 = dma.hbm_to_vmem [thread:$0]  %s3794_s5, 256, %s54_s20, [#allocation7], %s3263_s13, %s3263_s13, %s3264_s14  }
  0x2d   :  { %s3242_s3 = scalar_lea.vmem %s86_s10, 512  ;;  %p3247_p7 = scmp.lt.s32.totalorder %s86_s10, %s86_s10 }
  0x2e   :  { %p3243_p6 = scmp.ne.s32.totalorder %s86_s10, %s3242_s3  ;;  %p3248_p8 = scmp.lt.s32.totalorder %s3242_s3, %s3242_s3 }
  0x30   :  { %p3249_p9 = por %p3248_p8, %p3247_p7 }
  0x32   :  { %p3250_p10 = pnand %p3249_p9, %p3243_p6 }
  0x34   :  { %3253 = shalt.err (!%p3250_p10)
}
  0x35   :  { %91 = dma.hbm_to_vmem [thread:$0]  %s3800_s11, 512, %s86_s10, [#allocation10], %s3263_s13, %s3263_s13, %s3264_s14  }
  0x36   :  { %3254 = dma.done.wait [#allocation5], 256  }
  0x37   :  { %3255 = vsyncadd [#allocation5], 4294967040 }
  0x38   :  { %3256 = dma.done.wait [#allocation7], 384  }
  0x39   :  { %3257 = vsyncadd [#allocation7], 4294966912 }
  0x3a   :  { %3258 = dma.done.wait [#allocation10], 768  }
  0x3b   :  { %3259 = vsyncadd [#allocation10], 4294966528  ;;  %v3267_v0 = vmov 0.0   ;;  %vm3268_vm0 = vmmov 0   ;;  %vm123_vm1 = vcmask 1045504   ;;  %vm119_vm2 = vcmask 48128  }
  0x3c   :  { %2880 = vmatprep.subr.mxu1 %v3267_v0  ;;  %2882 = vmatprep.mubr.msk.f32.mxu1 %vm3268_vm0, %v3267_v0  ;;  %vm212_vm3 = vcmask 1040384   ;;  %vm205_vm4 = vcmask 72704   ;;  %v114_v1 = vld [vmem:[#allocation6] sm:$0x3f]  ;;  %v113_v2 = vld [vmem:[%s3789_s0] sm:$0x3]  ;;  %v336_v31 = vlaneseq }
  0x3d   :  { %v200_v3 = vld [vmem:[#allocation8 + $0x8] sm:$0x1]  ;;  %2881 = vmatpush3.msk.msra.mxu1 %vm123_vm1, %v114_v1  ;;  %v199_v4 = vld [vmem:[#allocation8] sm:$0xff]  ;;  %v198_v6 = vld [vmem:[%s3790_s1 + $0x8] sm:$0x3f]  ;;  %vm292_vm5 = vcmask 253952  }
  0x3e   :  { %v197_v5 = vld [vmem:[%s3790_s1] sm:$0xff]  ;;  %2883 = vmatmul.mubr.msk.f32.vlgmr.msra.gmra.mxu1 %vm119_vm2, %v113_v2  ;;  %2885 = vmatprep.subr.msk.mxu1 %vm212_vm3, %v200_v3  ;;  %v316_v7 = vld [vmem:[%s3795_s6 + $0x18] sm:$0xff]  ;;  %v315_v8 = vld [vmem:[%s3795_s6 + $0x10] sm:$0xff]  ;;  %vm303_vm6 = vcmask 254977   ;;  %vm311_vm7 = vcmask 259072   ;;  %vm298_vm8 = vcmask 260096  }
  0x3f   :  { %2886 = vmatpush3.msk.msra.mxu1 %vm212_vm3, %v200_v3  ;;  %2889 = vmatprep.mubr.msk.f32.mxu1 %vm205_vm4, %v197_v5  ;;  %v314_v9 = vld [vmem:[%s3795_s6 + $0x8] sm:$0xff]  ;;  %v313_v10 = vld [vmem:[%s3795_s6] sm:$0xff]  ;;  %vm309_vm9 = vcmask 261127   ;;  %vm340_vm10 = vcmask 261120   ;;  %v3407_v32 = vshrl.u32 %v336_v31, 7  ;;  %s3269_s18 = smov 96  }
  0x40   :  { %2887 = vmatprep.subr.mxu1 %v199_v4  ;;  %2892 = vmatprep.subr.mxu0 %v316_v7  ;;  %v107_v11 = vld [vmem:[#allocation4] sm:$0xff]  ;;  %v2710_v12 = vld [vmem:[#allocation4 + $0x8] ss:$0 sm:$0xff]  ;;  %v2713_v17 = vld [vmem:[#allocation4 + $0x9] ss:$0 sm:$0xff]  ;;  %s3270_s19 = smov 112  }
  0x41   :  { %2888 = vmatpush3.msra.mxu1 %v199_v4  ;;  %2893 = vmatpush3.msra.mxu0 %v316_v7  ;;  %v300_v13 = vrot.slane %v107_v11, 7  ;;  %v305_v20 = vrot.slane %v107_v11, 2  ;;  %v295_v23 = vrot.slane %v107_v11, 1  ;;  %v338_v33 = vsub.s32 0, %v3407_v32  ;;  %v3410_v34 = vld [vmem:[#allocation9] sm:$0xff]  ;;  %s3271_s20 = smov 80  }
  0x42   :  { %2890 = vmatmul.mubr.msk.f32.vlgmr.msra.gmra.mxu1 %vm205_vm4, %v198_v6  ;;  %2903 = vmatprep.subr.mxu1 %v3267_v0  ;;  %vm427_vm11 = vcmask 130048   ;;  %vm503_vm12 = vcmask 64512   ;;  %s3272_s21 = smov 64   ;;  %s3273_s10 = smov 48   ;;  %vm761_vm13 = vcmask 261248   ;;  %vm1318_vm14 = vcmask 523264  }
  0x43   :  { %2905 = vmatprep.mubr.msk.f32.mxu1 %vm3268_vm0, %v3267_v0  ;;  %2894 = vmatprep.subr.mxu0 %v315_v8  ;;  %v339_v36 = vrot.slane %v3410_v34, %v338_v33  ;;  %s3274_s27 = smov 16   ;;  %vm2576_vm15 = vcmask 254976  }
  0x44   :  { %2895 = vmatpush3.msra.mxu0 %v315_v8 }
  0x45   :  { %2896 = vmatprep.subr.mxu0 %v314_v9 }
  0x46   :  { %2897 = vmatpush3.msra.mxu0 %v314_v9 }
  0x47   :  { %2898 = vmatprep.subr.mxu0 %v313_v10 }
  0x48   :  { %2899 = vmatpush3.msra.mxu0 %v313_v10 }
  0x49   :  { %2913 = vmatprep.subr.mxu0 %v3267_v0 }
  0xfe   :  { %v193_v14 = vpop.f32.mrf.mxu1 }
  0xff   :  { %v194_v15 = vadd.f32 %v2710_v12, %v193_v14 }
 0x100   :  { %v2884_v16 = vpop.f32.mrf.mxu1 }
 0x101   :  { %v291_v18 = vadd.f32 %v194_v15, %v107_v11  ;;  %v302_v19 = vadd.f32 %v300_v13, %v194_v15 }
 0x102   :  { %v2891_v21 = vpop.f32.mrf.mxu1 }
 0x103   :  { %293 = vst.msk [vmem:[#allocation2] sm:$0x1] %vm292_vm5, %v291_v18  ;;  %v288_v22 = vadd.f32 %v2891_v21, %v2713_v17 }
 0x104   :  { %304 = vst.msk [vmem:[#allocation2 + $0x7] sm:$0x2] %vm303_vm6, %v302_v19  ;;  %v282_v24 = vpop.f32.mrf.mxu1 }
 0x105   :  { %v308_v25 = vadd.f32 %v305_v20, %v288_v22  ;;  %v283_v26 = vadd.f32 %v2713_v17, %v282_v24 }
 0x107   :  { %312 = vst.msk [vmem:[#allocation2 + $0xa] sm:$0x3f] %vm311_vm7, %v308_v25  ;;  %v297_v27 = vadd.f32 %v295_v23, %v283_v26  ;;  %v307_v28 = vadd.f32 %v305_v20, %v283_v26 }
 0x109   :  { %299 = vst.msk [vmem:[#allocation2 + $0x1] sm:$0x7f] %vm298_vm8, %v297_v27 }
 0x10a   :  { %310 = vst.msk [vmem:[#allocation2 + $0x2] sm:$0x80] %vm309_vm9, %v307_v28 }
 0x110   :  { %v3397_v29 = vld [vmem:[#allocation2] sm:$0xff] }
 0x111   :  { %v3399_v30 = vld [vmem:[#allocation2 + $0x8] sm:$0xff]  ;;  %2900 = vmatprep.mubr.msk.f32.mxu0 %vm340_vm10, %v3397_v29 }
 0x112   :  { %2901 = vmatmul.mubr.msk.f32.vlgmr.msra.gmra.mxu0 %vm340_vm10, %v3399_v30 }
 0x113   :  { %2915 = vmatprep.mubr.msk.f32.mxu0 %vm3268_vm0, %v3267_v0 }
 0x1d2   :  { %v2902_v35 = vpop.f32.mrf.mxu0 }
 0x1d3   :  { %v3421_v40 = vadd.f32 %v2902_v35, %v339_v36 }
 0x1d4   :  { %v413_v37 = vpop.f32.mrf.mxu0 }
 0x1d5   :  { %v3415_v38 = vadd.f32 %v413_v37, %v339_v36  ;;  %v423_v41 = vmul.f32 0.25, %v3421_v40 }
 0x1d7   :  { %425 = vrot.lane.b32.xlu0 %v3415_v38, %s3269_s18  ;;  %v422_v39 = vmul.f32 0.25, %v3415_v38 }
 0x1d9   :  { %592 = vrot.lane.b32.xlu1 %v422_v39, %s3270_s19 }
 0x1db   :  { %594 = vrot.lane.b32.xlu0 %v3415_v38, %s3271_s20 }
 0x1dd   :  { %764 = vrot.lane.b32.xlu1 %v3421_v40, %s3269_s18 }
 0x1df   :  { %931 = vrot.lane.b32.xlu0 %v3421_v40, %s3271_s20 }
 0x1e1   :  { %929 = vrot.lane.b32.xlu1 %v423_v41, %s3270_s19 }
 0x249   :  { %v426_v42 = vpop.permute.xlu0 %425 }
 0x24a   :  { %2904 = vmatpush3.xpose.msk.msra.mxu1 %vm427_vm11, %v426_v42  ;;  %v318_v42 = vld [vmem:[%s3796_s7 + $0x8] sm:$0xff] }
 0x24b   :  { %v593_v43 = vpop.permute.xlu1 %592  ;;  %2908 = vmatprep.subr.mxu1 %v3267_v0 }
 0x24d   :  { %v595_v44 = vpop.permute.xlu0 %594  ;;  %2906 = vmatmul.mubr.msk.f32.vlgmr.msra.gmra.mxu1 %vm427_vm11, %v422_v39  ;;  %v320_v39 = vld [vmem:[%s3796_s7 + $0x18] sm:$0xff] }
 0x24e   :  { %2914 = vmatpush3.xpose.msk.msra.mxu0 %vm427_vm11, %v595_v44  ;;  %2910 = vmatprep.mubr.msk.f32.mxu1 %vm3268_vm0, %v3267_v0  ;;  %v317_v44 = vld [vmem:[%s3796_s7] sm:$0xff] }
 0x24f   :  { %2923 = vmatprep.subr.mxu0 %v3267_v0  ;;  %v765_v45 = vpop.permute.xlu1 %764 }
 0x251   :  { %2916 = vmatmul.mubr.msk.f32.vlgmr.msra.gmra.mxu0 %vm427_vm11, %v593_v43  ;;  %v932_v46 = vpop.permute.xlu0 %931 }
 0x252   :  { %2924 = vmatpush3.xpose.msk.msra.mxu0 %vm427_vm11, %v765_v45  ;;  %2925 = vmatprep.mubr.msk.f32.mxu0 %vm3268_vm0, %v3267_v0 }
 0x253   :  { %2933 = vmatprep.subr.mxu0 %v3267_v0  ;;  %v930_v47 = vpop.permute.xlu1 %929 }
 0x255   :  { %2926 = vmatmul.mubr.msk.f32.vlgmr.msra.gmra.mxu0 %vm427_vm11, %v423_v41 }
 0x256   :  { %2934 = vmatpush3.xpose.msk.msra.mxu0 %vm427_vm11, %v932_v46  ;;  %2935 = vmatprep.mubr.msk.f32.mxu0 %vm3268_vm0, %v3267_v0 }
 0x257   :  { %2943 = vmatprep.subr.mxu0 %v320_v39 }
 0x259   :  { %2936 = vmatmul.mubr.msk.f32.vlgmr.msra.gmra.mxu0 %vm427_vm11, %v930_v47 }
 0x25a   :  { %2944 = vmatpush3.msra.mxu0 %v320_v39 }
 0x30d   :  { %v499_v48 = vpop.f32.mrf.mxu1 }
 0x30e   :  { %v504_v49 = vsel %vm503_vm12, %v499_v48, -inf }
 0x30f   :  { %505 = vmax.xlane.f32.xlu0 %v504_v49  ;;  %v2907_v50 = vpop.f32.mrf.mxu1 }
 0x311   :  { %v666_v51 = vpop.f32.mrf.mxu0 }
 0x312   :  { %v670_v52 = vsel %vm503_vm12, %v666_v51, -inf }
 0x313   :  { %671 = vmax.xlane.f32.xlu1 %v670_v52  ;;  %v2917_v53 = vpop.f32.mrf.mxu0 }
 0x315   :  { %v837_v54 = vpop.f32.mrf.mxu0 }
 0x316   :  { %v841_v55 = vsel %vm503_vm12, %v837_v54, -inf }
 0x317   :  { %v2927_v56 = vpop.f32.mrf.mxu0  ;;  %842 = vmax.xlane.f32.xlu0 %v841_v55 }
 0x319   :  { %v1003_v57 = vpop.f32.mrf.mxu0 }
 0x31a   :  { %v1007_v58 = vsel %vm503_vm12, %v1003_v57, -inf }
 0x31b   :  { %v2937_v59 = vpop.f32.mrf.mxu0  ;;  %1008 = vmax.xlane.f32.xlu0 %v1007_v58 }
 0x324   :  { %515 = vrot.lane.b32.xlu1 %v3415_v38, %s3272_s21 }
 0x398   :  { %v506_v60 = vpop.xlane.xlu0 %505 }
 0x399   :  { %v507_v61 = vsub.f32 %v499_v48, %v506_v60 }
 0x39b   :  { %v508_v62 = vmul.f32 1.442695, %v507_v61 }
 0x39c   :  { %v672_v63 = vpop.xlane.xlu1 %671 }
 0x39d   :  { %3102 = vpow2.f32 %v508_v62  ;;  %v673_v1 = vsub.f32 %v666_v51, %v672_v63 }
 0x39f   :  { %v674_v2 = vmul.f32 1.442695, %v673_v1 }
 0x3a0   :  { %v516_v3 = vpop.permute.xlu1 %515  ;;  %v843_v4 = vpop.xlane.xlu0 %842 }
 0x3a1   :  { %3104 = vpow2.f32 %v674_v2  ;;  %v844_v5 = vsub.f32 %v837_v54, %v843_v4  ;;  %2909 = vmatpush3.msra.mxu1 %v516_v3  ;;  %v1103_v54 = vsub.s32 1, %v3407_v32 }
 0x3a2   :  { %2918 = vmatprep.subr.mxu1 %v3267_v0 }
 0x3a3   :  { %v845_v6 = vmul.f32 1.442695, %v844_v5  ;;  %v1104_v55 = vrot.slane %v3410_v34, %v1103_v54 }
 0x3a4   :  { %v1009_v7 = vpop.xlane.xlu0 %1008 }
 0x3a5   :  { %3106 = vpow2.f32 %v845_v6  ;;  %v1010_v8 = vsub.f32 %v1003_v57, %v1009_v7 }
 0x3a7   :  { %v1011_v9 = vmul.f32 1.442695, %v1010_v8 }
 0x3a9   :  { %3108 = vpow2.f32 %v1011_v9 }
 0x3aa   :  { %v3103_v10 = vpop.eup %3102 }
 0x3ab   :  { %v510_v11 = vsel %vm503_vm12, %v3103_v10, 0.0 }
 0x3ac   :  { %511 = vadd.xlane.f32.xlu1 %v510_v11  ;;  %v322_v11 = vld [vmem:[%s3797_s8 + $0x8] sm:$0xff] }
 0x3ae   :  { %v3105_v12 = vpop.eup %3104 }
 0x3af   :  { %v676_v13 = vsel %vm503_vm12, %v3105_v12, 0.0 }
 0x3b0   :  { %677 = vadd.xlane.f32.xlu0 %v676_v13  ;;  %v332_v13 = vld [vmem:[%s3798_s9 + $0x38] sm:$0xff] }
 0x3b2   :  { %v3107_v14 = vpop.eup %3106 }
 0x3b3   :  { %v847_v15 = vsel %vm503_vm12, %v3107_v14, 0.0 }
 0x3b4   :  { %848 = vadd.xlane.f32.xlu1 %v847_v15  ;;  %v330_v15 = vld [vmem:[%s3798_s9 + $0x28] sm:$0xff] }
 0x3b6   :  { %v3109_v16 = vpop.eup %3108 }
 0x3b7   :  { %v1013_v17 = vsel %vm503_vm12, %v3109_v16, 0.0 }
 0x3b8   :  { %1014 = vadd.xlane.f32.xlu0 %v1013_v17 }
 0x3c5   :  { %852 = vrot.lane.b32.xlu1 %v3421_v40, %s3272_s21 }
 0x3c9   :  { %1018 = vrot.lane.b32.xlu1 %v3421_v40, %s3273_s10  ;;  %v319_v40 = vld [vmem:[%s3796_s7 + $0x10] sm:$0xff] }
 0x3ca   :  { %2945 = vmatprep.subr.mxu0 %v319_v40 }
 0x3cb   :  { %2946 = vmatpush3.msra.mxu0 %v319_v40  ;;  %v328_v40 = vld [vmem:[%s3798_s9 + $0x18] sm:$0xff] }
 0x3cc   :  { %2947 = vmatprep.subr.mxu0 %v318_v42 }
 0x3cd   :  { %2948 = vmatpush3.msra.mxu0 %v318_v42  ;;  %v326_v42 = vld [vmem:[%s3798_s9 + $0x8] sm:$0xff] }
 0x3ce   :  { %681 = vrot.lane.b32.xlu0 %v3415_v38, %s3273_s10  ;;  %2949 = vmatprep.subr.mxu0 %v317_v44 }
 0x3cf   :  { %2950 = vmatpush3.msra.mxu0 %v317_v44  ;;  %v1229_v44 = vsub.s32 2, %v3407_v32 }
 0x3d0   :  { %2965 = vmatprep.subr.mxu0 %v332_v13 }
 0x435   :  { %v512_v18 = vpop.xlane.xlu1 %511 }
 0x436   :  { %3110 = vrcp.f32 %v512_v18 }
 0x439   :  { %v678_v19 = vpop.xlane.xlu0 %677 }
 0x43a   :  { %3112 = vrcp.f32 %v678_v19 }
 0x43d   :  { %v849_v20 = vpop.xlane.xlu1 %848 }
 0x43e   :  { %3114 = vrcp.f32 %v849_v20 }
 0x441   :  { %v1015_v21 = vpop.xlane.xlu0 %1014  ;;  %v853_v26 = vpop.permute.xlu1 %852 }
 0x442   :  { %3116 = vrcp.f32 %v1015_v21 }
 0x443   :  { %v3111_v22 = vpop.eup %3110 }
 0x444   :  { %v514_v23 = vmul.f32 %v3111_v22, %v3103_v10  ;;  %v323_v10 = vld [vmem:[%s3797_s8 + $0x10] sm:$0xff] }
 0x445   :  { %v682_v24 = vpop.permute.xlu0 %681  ;;  %v1019_v35 = vpop.permute.xlu1 %1018 }
 0x446   :  { %2911 = vmatmul.mubr.msk.f32.vlgmr.msra.gmra.mxu1 %vm503_vm12, %v514_v23  ;;  %v1217_v23 = vsub.s32 4, %v3407_v32 }
 0x447   :  { %v3113_v25 = vpop.eup %3112  ;;  %2919 = vmatpush3.msra.mxu1 %v682_v24  ;;  %2920 = vmatprep.mubr.msk.f32.mxu1 %vm3268_vm0, %v3267_v0  ;;  %v1223_v24 = vsub.s32 5, %v3407_v32 }
 0x448   :  { %2928 = vmatprep.subr.mxu1 %v3267_v0  ;;  %v680_v27 = vmul.f32 %v3113_v25, %v3105_v12  ;;  %v321_v12 = vld [vmem:[%s3797_s8] sm:$0xff]  ;;  %v1218_v25 = vrot.slane %v3410_v34, %v1217_v23 }
 0x44a   :  { %2921 = vmatmul.mubr.msk.f32.vlgmr.msra.gmra.mxu1 %vm503_vm12, %v680_v27 }
 0x44b   :  { %v3115_v28 = vpop.eup %3114  ;;  %2929 = vmatpush3.msra.mxu1 %v853_v26  ;;  %2930 = vmatprep.mubr.msk.f32.mxu1 %vm3268_vm0, %v3267_v0 }
 0x44c   :  { %2938 = vmatprep.subr.mxu1 %v3267_v0  ;;  %v851_v31 = vmul.f32 %v3115_v28, %v3107_v14  ;;  %v331_v14 = vld [vmem:[%s3798_s9 + $0x30] sm:$0xff]  ;;  %v1224_v28 = vrot.slane %v3410_v34, %v1223_v24 }
 0x44e   :  { %2931 = vmatmul.mubr.msk.f32.vlgmr.msra.gmra.mxu1 %vm503_vm12, %v851_v31 }
 0x44f   :  { %v3117_v36 = vpop.eup %3116  ;;  %2939 = vmatpush3.msra.mxu1 %v1019_v35  ;;  %2940 = vmatprep.mubr.msk.f32.mxu1 %vm3268_vm0, %v3267_v0 }
 0x450   :  { %v1017_v37 = vmul.f32 %v3117_v36, %v3109_v16  ;;  %v329_v16 = vld [vmem:[%s3798_s9 + $0x20] sm:$0xff] }
 0x452   :  { %2941 = vmatmul.mubr.msk.f32.vlgmr.msra.gmra.mxu1 %vm503_vm12, %v1017_v37 }
 0x506   :  { %v587_v38 = vpop.f32.mrf.mxu1 }
 0x507   :  { %591 = vst.msk [vmem:[#allocation3] sm:$0xff] %vm427_vm11, %v587_v38 }
 0x508   :  { %v2912_v41 = vpop.f32.mrf.mxu1 }
 0x509   :  { %v327_v41 = vld [vmem:[%s3798_s9 + $0x10] sm:$0xff] }
 0x50a   :  { %v753_v43 = vpop.f32.mrf.mxu1 }
 0x50b   :  { %758 = vrot.lane.b32.xlu0 %v753_v43, %s3274_s27  ;;  %v325_v43 = vld [vmem:[%s3798_s9] sm:$0xff] }
 0x50c   :  { %v2922_v45 = vpop.f32.mrf.mxu1 }
 0x50d   :  { %v1230_v45 = vrot.slane %v3410_v34, %v1229_v44 }
 0x50e   :  { %v924_v46 = vpop.f32.mrf.mxu1 }
 0x50f   :  { %928 = vst.msk [vmem:[#allocation3 + $0x8] sm:$0xff] %vm427_vm11, %v924_v46 }
 0x510   :  { %v2932_v47 = vpop.f32.mrf.mxu1 }
 0x512   :  { %v1090_v48 = vpop.f32.mrf.mxu1 }
 0x513   :  { %1095 = vrot.lane.b32.xlu1 %v1090_v48, %s3274_s27 }
 0x514   :  { %v2942_v49 = vpop.f32.mrf.mxu1 }
 0x57d   :  { %v759_v50 = vpop.permute.xlu0 %758 }
 0x57e   :  { %762 = vst.msk [vmem:[#allocation3] sm:$0xff] %vm761_vm13, %v759_v50 }
 0x585   :  { %v1096_v51 = vpop.permute.xlu1 %1095  ;;  %v1099_v52 = vld [vmem:[#allocation3] sm:$0xff] }
 0x586   :  { %1098 = vst.msk [vmem:[#allocation3 + $0x8] sm:$0xff] %vm761_vm13, %v1096_v51  ;;  %2951 = vmatprep.mubr.msk.f32.mxu0 %vm340_vm10, %v1099_v52  ;;  %v1316_v52 = vsub.s32 3, %v3407_v32 }
 0x58d   :  { %v1100_v53 = vld [vmem:[#allocation3 + $0x8] sm:$0xff] }
 0x58e   :  { %2952 = vmatmul.mubr.msk.f32.vlgmr.msra.gmra.mxu0 %vm340_vm10, %v1100_v53  ;;  %v1317_v53 = vrot.slane %v3410_v34, %v1316_v52 }
 0x58f   :  { %2966 = vmatpush3.msra.mxu0 %v332_v13 }
 0x590   :  { %2967 = vmatprep.subr.mxu0 %v331_v14 }
 0x591   :  { %2968 = vmatpush3.msra.mxu0 %v331_v14 }
 0x592   :  { %2969 = vmatprep.subr.mxu0 %v330_v15 }
 0x593   :  { %2970 = vmatpush3.msra.mxu0 %v330_v15 }
 0x594   :  { %2971 = vmatprep.subr.mxu0 %v329_v16 }
 0x595   :  { %2972 = vmatpush3.msra.mxu0 %v329_v16 }
 0x596   :  { %2973 = vmatprep.subr.mxu0 %v328_v40 }
 0x597   :  { %2974 = vmatpush3.msra.mxu0 %v328_v40 }
 0x598   :  { %2975 = vmatprep.subr.mxu0 %v327_v41 }
 0x599   :  { %2976 = vmatpush3.msra.mxu0 %v327_v41 }
 0x59a   :  { %2977 = vmatprep.subr.mxu0 %v326_v42 }
 0x59b   :  { %2978 = vmatpush3.msra.mxu0 %v326_v42 }
 0x59c   :  { %2979 = vmatprep.subr.mxu0 %v325_v43 }
 0x59d   :  { %2980 = vmatpush3.msra.mxu0 %v325_v43 }
 0x59e   :  { %3005 = vmatprep.subr.mxu0 %v3267_v0 }
 0x64e   :  { %v2953_v56 = vpop.f32.mrf.mxu0 }
 0x64f   :  { %v1183_v57 = vadd.f32 %v2953_v56, %v1104_v55 }
 0x650   :  { %v1177_v58 = vpop.f32.mrf.mxu0 }
 0x651   :  { %v1178_v59 = vadd.f32 %v1177_v58, %v1104_v55  ;;  %v1187_v60 = vadd.f32 %v1183_v57, %v3399_v30 }
 0x653   :  { %v1191_v61 = vsel %vm340_vm10, %v1187_v60, 0.0  ;;  %v1186_v62 = vadd.f32 %v1178_v59, %v3397_v29  ;;  %v324_v29 = vld [vmem:[%s3797_s8 + $0x18] sm:$0xff] }
 0x654   :  { %1192 = vadd.xlane.f32.xlu1 %v1191_v61  ;;  %2954 = vmatprep.subr.mxu1 %v324_v29 }
 0x655   :  { %v1188_v63 = vsel %vm340_vm10, %v1186_v62, 0.0  ;;  %2955 = vmatpush3.msra.mxu1 %v324_v29  ;;  %v2739_v29 = vld [vmem:[%s3795_s6 + $0x30] sm:$0xff] }
 0x656   :  { %1189 = vadd.xlane.f32.xlu0 %v1188_v63  ;;  %2956 = vmatprep.subr.mxu1 %v323_v10 }
 0x657   :  { %2957 = vmatpush3.msra.mxu1 %v323_v10  ;;  %v2738_v10 = vld [vmem:[%s3795_s6 + $0x28] sm:$0xff] }
 0x658   :  { %2958 = vmatprep.subr.mxu1 %v322_v11 }
 0x659   :  { %2959 = vmatpush3.msra.mxu1 %v322_v11  ;;  %v2737_v11 = vld [vmem:[%s3795_s6 + $0x20] sm:$0xff] }
 0x65a   :  { %2960 = vmatprep.subr.mxu1 %v321_v12 }
 0x65b   :  { %2961 = vmatpush3.msra.mxu1 %v321_v12 }
 0x6dd   :  { %v1193_v1 = vpop.xlane.xlu1 %1192 }
 0x6de   :  { %v1196_v2 = vmul.f32 0.03125, %v1193_v1 }
 0x6df   :  { %v1190_v3 = vpop.xlane.xlu0 %1189 }
 0x6e0   :  { %v1195_v4 = vmul.f32 0.03125, %v1190_v3  ;;  %v1198_v5 = vsub.f32 %v1187_v60, %v1196_v2 }
 0x6e2   :  { %v1197_v6 = vsub.f32 %v1186_v62, %v1195_v4  ;;  %v1200_v9 = vmul.f32 %v1198_v5, %v1198_v5 }
 0x6e4   :  { %v1199_v7 = vmul.f32 %v1197_v6, %v1197_v6  ;;  %v1204_v30 = vsel %vm340_vm10, %v1200_v9, 0.0 }
 0x6e6   :  { %v1201_v8 = vsel %vm340_vm10, %v1199_v7, 0.0 }
 0x6e7   :  { %1202 = vadd.xlane.f32.xlu0 %v1201_v8 }
 0x6eb   :  { %1205 = vadd.xlane.f32.xlu0 %v1204_v30  ;;  %v2740_v30 = vld [vmem:[%s3795_s6 + $0x38] sm:$0xff] }
 0x6ec   :  { %2984 = vmatprep.subr.mxu1 %v2740_v30 }
 0x770   :  { %v1203_v17 = vpop.xlane.xlu0 %1202 }
 0x771   :  { %v1207_v18 = vmul.f32 0.03125, %v1203_v17 }
 0x773   :  { %v1209_v19 = vadd.f32 1e-05, %v1207_v18  ;;  %v1430_v18 = vsub.s32 6, %v3407_v32 }
 0x774   :  { %v1206_v20 = vpop.xlane.xlu0 %1205 }
 0x775   :  { %3118 = vrsqrt.f32 %v1209_v19  ;;  %v1208_v21 = vmul.f32 0.03125, %v1206_v20  ;;  %v1436_v19 = vsub.s32 7, %v3407_v32  ;;  %v1431_v20 = vrot.slane %v3410_v34, %v1430_v18 }
 0x777   :  { %v1210_v22 = vadd.f32 1e-05, %v1208_v21 }
 0x779   :  { %3120 = vrsqrt.f32 %v1210_v22  ;;  %v1437_v22 = vrot.slane %v3410_v34, %v1436_v19  ;;  %v3603_v34 = vld [vmem:[#allocation9 + $0x8] sm:$0xff] }
 0x77a   :  { %v1473_v40 = vrot.slane %v3603_v34, %v338_v33 }
 0x782   :  { %v3119_v26 = vpop.eup %3118 }
 0x783   :  { %v1213_v27 = vmul.f32 %v3119_v26, %v1197_v6 }
 0x785   :  { %v1219_v31 = vmul.f32 %v1218_v25, %v1213_v27 }
 0x786   :  { %v3121_v35 = vpop.eup %3120 }
 0x787   :  { %v1214_v36 = vmul.f32 %v3121_v35, %v1198_v5  ;;  %v1225_v37 = vadd.f32 %v1224_v28, %v1219_v31 }
 0x789   :  { %v1220_v38 = vmul.f32 %v1218_v25, %v1214_v36  ;;  %2962 = vmatprep.mubr.msk.f32.mxu1 %vm340_vm10, %v1225_v37 }
 0x78b   :  { %v1226_v39 = vadd.f32 %v1224_v28, %v1220_v38 }
 0x78d   :  { %2963 = vmatmul.mubr.msk.f32.vlgmr.msra.gmra.mxu1 %vm340_vm10, %v1226_v39 }
 0x78e   :  { %2985 = vmatpush3.msra.mxu1 %v2740_v30 }
 0x78f   :  { %2986 = vmatprep.subr.mxu1 %v2739_v29 }
 0x790   :  { %2987 = vmatpush3.msra.mxu1 %v2739_v29 }
 0x791   :  { %2988 = vmatprep.subr.mxu1 %v2738_v10 }
 0x792   :  { %2989 = vmatpush3.msra.mxu1 %v2738_v10 }
 0x793   :  { %2990 = vmatprep.subr.mxu1 %v2737_v11 }
 0x794   :  { %2991 = vmatpush3.msra.mxu1 %v2737_v11 }
 0x795   :  { %2995 = vmatprep.subr.mxu1 %v3267_v0 }
 0x84d   :  { %v2964_v46 = vpop.f32.mrf.mxu1 }
 0x84e   :  { %v1309_v47 = vadd.f32 %v2964_v46, %v1230_v45 }
 0x84f   :  { %v1303_v48 = vpop.f32.mrf.mxu1 }
 0x850   :  { %v1304_v49 = vadd.f32 %v1303_v48, %v1230_v45  ;;  %v1313_v51 = vmax.f32 %v1309_v47, 0.0 }
 0x852   :  { %v1312_v50 = vmax.f32 %v1304_v49, 0.0 }
 0x854   :  { %2981 = vmatprep.mubr.msk.f32.mxu0 %vm1318_vm14, %v1312_v50 }
 0x855   :  { %2982 = vmatmul.mubr.msk.f32.vlgmr.msra.gmra.mxu0 %vm1318_vm14, %v1313_v51 }
 0x856   :  { %3007 = vmatprep.mubr.msk.f32.mxu0 %vm3268_vm0, %v3267_v0 }
 0x915   :  { %v2983_v55 = vpop.f32.mrf.mxu0 }
 0x916   :  { %v1397_v56 = vadd.f32 %v2983_v55, %v1317_v53 }
 0x917   :  { %v1391_v57 = vpop.f32.mrf.mxu0 }
 0x918   :  { %v1392_v58 = vadd.f32 %v1391_v57, %v1317_v53  ;;  %v1401_v59 = vadd.f32 %v1397_v56, %v1226_v39 }
 0x91a   :  { %v1405_v60 = vsel %vm340_vm10, %v1401_v59, 0.0  ;;  %v1400_v61 = vadd.f32 %v1392_v58, %v1225_v37 }
 0x91b   :  { %1406 = vadd.xlane.f32.xlu0 %v1405_v60 }
 0x91c   :  { %v1402_v62 = vsel %vm340_vm10, %v1400_v61, 0.0 }
 0x91d   :  { %1403 = vadd.xlane.f32.xlu1 %v1402_v62 }
 0x9a4   :  { %v1407_v63 = vpop.xlane.xlu0 %1406 }
 0x9a5   :  { %v1409_v1 = vmul.f32 0.03125, %v1407_v63 }
 0x9a6   :  { %v1404_v2 = vpop.xlane.xlu1 %1403 }
 0x9a7   :  { %v1411_v3 = vsub.f32 %v1401_v59, %v1409_v1  ;;  %v1408_v4 = vmul.f32 0.03125, %v1404_v2 }
 0x9a9   :  { %v1410_v5 = vsub.f32 %v1400_v61, %v1408_v4  ;;  %v1413_v6 = vmul.f32 %v1411_v3, %v1411_v3 }
 0x9ab   :  { %v1417_v7 = vsel %vm340_vm10, %v1413_v6, 0.0  ;;  %v1412_v8 = vmul.f32 %v1410_v5, %v1410_v5 }
 0x9ac   :  { %1418 = vadd.xlane.f32.xlu0 %v1417_v7 }
 0x9ad   :  { %v1414_v9 = vsel %vm340_vm10, %v1412_v8, 0.0 }
 0x9ae   :  { %1415 = vadd.xlane.f32.xlu1 %v1414_v9 }
 0xa35   :  { %v1419_v12 = vpop.xlane.xlu0 %1418 }
 0xa36   :  { %v1421_v13 = vmul.f32 0.03125, %v1419_v12 }
 0xa37   :  { %v1416_v14 = vpop.xlane.xlu1 %1415 }
 0xa38   :  { %v1423_v15 = vadd.f32 1e-05, %v1421_v13  ;;  %v1420_v16 = vmul.f32 0.03125, %v1416_v14 }
 0xa3a   :  { %3122 = vrsqrt.f32 %v1423_v15  ;;  %v1422_v17 = vadd.f32 1e-05, %v1420_v16 }
 0xa3c   :  { %3124 = vrsqrt.f32 %v1422_v17 }
 0xa47   :  { %v3123_v21 = vpop.eup %3122 }
 0xa48   :  { %v1427_v25 = vmul.f32 %v3123_v21, %v1411_v3 }
 0xa49   :  { %v3125_v26 = vpop.eup %3124 }
 0xa4a   :  { %v1433_v27 = vmul.f32 %v1431_v20, %v1427_v25  ;;  %v1426_v28 = vmul.f32 %v3125_v26, %v1410_v5 }
 0xa4c   :  { %v1439_v31 = vadd.f32 %v1437_v22, %v1433_v27  ;;  %v1432_v35 = vmul.f32 %v1431_v20, %v1426_v28 }
 0xa4e   :  { %1441 = vst.msk [vmem:[#allocation2 + $0x8] sm:$0xff] %vm340_vm10, %v1439_v31  ;;  %v1438_v36 = vadd.f32 %v1437_v22, %v1432_v35 }
 0xa50   :  { %1440 = vst.msk [vmem:[#allocation2] sm:$0xff] %vm340_vm10, %v1438_v36 }
 0xa55   :  { %v3597_v38 = vld [vmem:[#allocation2 + $0x8] sm:$0xff] }
 0xa57   :  { %v3593_v37 = vld [vmem:[#allocation2] sm:$0xff] }
 0xa58   :  { %2992 = vmatprep.mubr.msk.f32.mxu1 %vm340_vm10, %v3593_v37 }
 0xa59   :  { %2993 = vmatmul.mubr.msk.f32.vlgmr.msra.gmra.mxu1 %vm340_vm10, %v3597_v38 }
 0xa5a   :  { %2997 = vmatprep.mubr.msk.f32.mxu1 %vm3268_vm0, %v3267_v0 }
 0xb19   :  { %v2994_v39 = vpop.f32.mrf.mxu1 }
 0xb1a   :  { %v3614_v43 = vadd.f32 %v2994_v39, %v1473_v40 }
 0xb1b   :  { %v1546_v41 = vpop.f32.mrf.mxu1 }
 0xb1c   :  { %v3608_v42 = vadd.f32 %v1546_v41, %v1473_v40  ;;  %v1556_v33 = vmul.f32 0.25, %v3614_v43 }
 0xb1e   :  { %1725 = vrot.lane.b32.xlu0 %v3608_v42, %s3271_s20  ;;  %1558 = vrot.lane.b32.xlu1 %v3608_v42, %s3269_s18  ;;  %v1555_v45 = vmul.f32 0.25, %v3608_v42 }
 0xb22   :  { %2061 = vrot.lane.b32.xlu0 %v3614_v43, %s3271_s20  ;;  %1723 = vrot.lane.b32.xlu1 %v1555_v45, %s3270_s19 }
 0xb26   :  { %1894 = vrot.lane.b32.xlu1 %v3614_v43, %s3269_s18 }
 0xb2a   :  { %2059 = vrot.lane.b32.xlu1 %v1556_v33, %s3270_s19 }
 0xb90   :  { %v1726_v46 = vpop.permute.xlu0 %1725  ;;  %v1559_v47 = vpop.permute.xlu1 %1558 }
 0xb91   :  { %2996 = vmatpush3.xpose.msk.msra.mxu1 %vm427_vm11, %v1559_v47  ;;  %3006 = vmatpush3.xpose.msk.msra.mxu0 %vm427_vm11, %v1726_v46 }
 0xb92   :  { %3015 = vmatprep.subr.mxu0 %v3267_v0  ;;  %3000 = vmatprep.subr.mxu1 %v3267_v0 }
 0xb94   :  { %v1724_v48 = vpop.permute.xlu1 %1723  ;;  %2998 = vmatmul.mubr.msk.f32.vlgmr.msra.gmra.mxu1 %vm427_vm11, %v1555_v45  ;;  %v2062_v50 = vpop.permute.xlu0 %2061 }
 0xb95   :  { %3008 = vmatmul.mubr.msk.f32.vlgmr.msra.gmra.mxu0 %vm427_vm11, %v1724_v48  ;;  %3002 = vmatprep.mubr.msk.f32.mxu1 %vm3268_vm0, %v3267_v0 }
 0xb96   :  { %3017 = vmatprep.mubr.msk.f32.mxu0 %vm3268_vm0, %v3267_v0 }
 0xb98   :  { %v1895_v49 = vpop.permute.xlu1 %1894 }
 0xb99   :  { %3016 = vmatpush3.xpose.msk.msra.mxu0 %vm427_vm11, %v1895_v49  ;;  %v2744_v49 = vld [vmem:[%s3796_s7 + $0x38] sm:$0xff] }
 0xb9a   :  { %3025 = vmatprep.subr.mxu0 %v3267_v0 }
 0xb9c   :  { %3018 = vmatmul.mubr.msk.f32.vlgmr.msra.gmra.mxu0 %vm427_vm11, %v1556_v33  ;;  %v2060_v51 = vpop.permute.xlu1 %2059 }
 0xb9d   :  { %3026 = vmatpush3.xpose.msk.msra.mxu0 %vm427_vm11, %v2062_v50  ;;  %3027 = vmatprep.mubr.msk.f32.mxu0 %vm3268_vm0, %v3267_v0  ;;  %v2743_v50 = vld [vmem:[%s3796_s7 + $0x30] sm:$0xff] }
 0xb9e   :  { %3035 = vmatprep.subr.mxu0 %v2744_v49 }
 0xba0   :  { %3028 = vmatmul.mubr.msk.f32.vlgmr.msra.gmra.mxu0 %vm427_vm11, %v2060_v51 }
 0xba1   :  { %3036 = vmatpush3.msra.mxu0 %v2744_v49 }
 0xba2   :  { %3037 = vmatprep.subr.mxu0 %v2743_v50 }
 0xba3   :  { %3038 = vmatpush3.msra.mxu0 %v2743_v50 }
 0xc54   :  { %v1631_v53 = vpop.f32.mrf.mxu1 }
 0xc55   :  { %v1797_v55 = vpop.f32.mrf.mxu0  ;;  %v1635_v56 = vsel %vm503_vm12, %v1631_v53, -inf }
 0xc56   :  { %1636 = vmax.xlane.f32.xlu0 %v1635_v56  ;;  %v2999_v57 = vpop.f32.mrf.mxu1  ;;  %v1801_v58 = vsel %vm503_vm12, %v1797_v55, -inf  ;;  %v2741_v56 = vld [vmem:[%s3796_s7 + $0x20] sm:$0xff] }
 0xc57   :  { %1802 = vmax.xlane.f32.xlu1 %v1801_v58  ;;  %v3009_v59 = vpop.f32.mrf.mxu0 }
 0xc5c   :  { %v1967_v60 = vpop.f32.mrf.mxu0 }
 0xc5d   :  { %v1971_v61 = vsel %vm503_vm12, %v1967_v60, -inf }
 0xc5e   :  { %v3019_v62 = vpop.f32.mrf.mxu0  ;;  %1972 = vmax.xlane.f32.xlu0 %v1971_v61 }
 0xc60   :  { %v2133_v63 = vpop.f32.mrf.mxu0 }
 0xc61   :  { %v2137_v1 = vsel %vm503_vm12, %v2133_v63, -inf }
 0xc62   :  { %v3029_v2 = vpop.f32.mrf.mxu0  ;;  %2138 = vmax.xlane.f32.xlu0 %v2137_v1 }
 0xc68   :  { %1646 = vrot.lane.b32.xlu1 %v3608_v42, %s3272_s21 }
 0xcdf   :  { %v1637_v3 = vpop.xlane.xlu0 %1636 }
 0xce0   :  { %v1638_v4 = vsub.f32 %v1631_v53, %v1637_v3  ;;  %v1803_v5 = vpop.xlane.xlu1 %1802  ;;  %v2742_v53 = vld [vmem:[%s3796_s7 + $0x28] sm:$0xff]  ;;  %v2234_v3 = vrot.slane %v3603_v34, %v1103_v54 }
 0xce1   :  { %v1804_v6 = vsub.f32 %v1797_v55, %v1803_v5  ;;  %3039 = vmatprep.subr.mxu0 %v2742_v53 }
 0xce2   :  { %v1639_v7 = vmul.f32 1.442695, %v1638_v4  ;;  %3040 = vmatpush3.msra.mxu0 %v2742_v53  ;;  %v2750_v53 = vld [vmem:[%s3798_s9 + $0x48] sm:$0xff] }
 0xce3   :  { %v1805_v8 = vmul.f32 1.442695, %v1804_v6  ;;  %3041 = vmatprep.subr.mxu0 %v2741_v56 }
 0xce4   :  { %3126 = vpow2.f32 %v1639_v7  ;;  %v1647_v9 = vpop.permute.xlu1 %1646  ;;  %3042 = vmatpush3.msra.mxu0 %v2741_v56  ;;  %v2359_v56 = vrot.slane %v3603_v34, %v1229_v44 }
 0xce5   :  { %3128 = vpow2.f32 %v1805_v8  ;;  %3001 = vmatpush3.msra.mxu1 %v1647_v9 }
 0xce6   :  { %3010 = vmatprep.subr.mxu1 %v3267_v0 }
 0xce7   :  { %v1973_v30 = vpop.xlane.xlu0 %1972 }
 0xce8   :  { %v1974_v29 = vsub.f32 %v1967_v60, %v1973_v30 }
 0xcea   :  { %v1975_v10 = vmul.f32 1.442695, %v1974_v29 }
 0xceb   :  { %v2139_v11 = vpop.xlane.xlu0 %2138 }
 0xcec   :  { %3130 = vpow2.f32 %v1975_v10  ;;  %v2140_v12 = vsub.f32 %v2133_v63, %v2139_v11 }
 0xcee   :  { %v2141_v13 = vmul.f32 1.442695, %v2140_v12 }
 0xcf0   :  { %3132 = vpow2.f32 %v2141_v13 }
 0xcf1   :  { %v3127_v14 = vpop.eup %3126 }
 0xcf2   :  { %v3129_v15 = vpop.eup %3128  ;;  %v1641_v16 = vsel %vm503_vm12, %v3127_v14, 0.0 }
 0xcf3   :  { %1642 = vadd.xlane.f32.xlu1 %v1641_v16  ;;  %v1807_v17 = vsel %vm503_vm12, %v3129_v15, 0.0 }
 0xcf4   :  { %1808 = vadd.xlane.f32.xlu0 %v1807_v17 }
 0xcf9   :  { %v3131_v20 = vpop.eup %3130 }
 0xcfa   :  { %v1977_v21 = vsel %vm503_vm12, %v3131_v20, 0.0 }
 0xcfb   :  { %1978 = vadd.xlane.f32.xlu1 %v1977_v21  ;;  %v2746_v21 = vld [vmem:[%s3797_s8 + $0x28] sm:$0xff] }
 0xcfd   :  { %v3133_v22 = vpop.eup %3132 }
 0xcfe   :  { %v2143_v25 = vsel %vm503_vm12, %v3133_v22, 0.0 }
 0xcff   :  { %2144 = vadd.xlane.f32.xlu0 %v2143_v25  ;;  %v2756_v25 = vld [vmem:[%s3798_s9 + $0x78] sm:$0xff] }
 0xd00   :  { %3057 = vmatprep.subr.mxu0 %v2756_v25 }
 0xd0c   :  { %1982 = vrot.lane.b32.xlu1 %v3614_v43, %s3272_s21 }
 0xd10   :  { %2148 = vrot.lane.b32.xlu1 %v3614_v43, %s3273_s10 }
 0xd15   :  { %1812 = vrot.lane.b32.xlu0 %v3608_v42, %s3273_s10 }
 0xd7c   :  { %v1643_v26 = vpop.xlane.xlu1 %1642 }
 0xd7d   :  { %3134 = vrcp.f32 %v1643_v26  ;;  %v1809_v27 = vpop.xlane.xlu0 %1808  ;;  %v2755_v26 = vld [vmem:[%s3798_s9 + $0x70] sm:$0xff] }
 0xd7e   :  { %3136 = vrcp.f32 %v1809_v27  ;;  %v2754_v27 = vld [vmem:[%s3798_s9 + $0x68] sm:$0xff] }
 0xd84   :  { %v1979_v28 = vpop.xlane.xlu1 %1978 }
 0xd85   :  { %3138 = vrcp.f32 %v1979_v28  ;;  %v2753_v28 = vld [vmem:[%s3798_s9 + $0x60] sm:$0xff] }
 0xd88   :  { %v2145_v31 = vpop.xlane.xlu0 %2144  ;;  %v1983_v41 = vpop.permute.xlu1 %1982 }
 0xd89   :  { %3140 = vrcp.f32 %v2145_v31 }
 0xd8a   :  { %v3135_v35 = vpop.eup %3134 }
 0xd8b   :  { %v1645_v36 = vmul.f32 %v3135_v35, %v3127_v14  ;;  %v3137_v39 = vpop.eup %3136 }
 0xd8c   :  { %v1813_v40 = vpop.permute.xlu0 %1812  ;;  %v1811_v42 = vmul.f32 %v3137_v39, %v3129_v15  ;;  %v2149_v33 = vpop.permute.xlu1 %2148 }
 0xd8d   :  { %3003 = vmatmul.mubr.msk.f32.vlgmr.msra.gmra.mxu1 %vm503_vm12, %v1645_v36 }
 0xd8e   :  { %3011 = vmatpush3.msra.mxu1 %v1813_v40  ;;  %3012 = vmatprep.mubr.msk.f32.mxu1 %vm3268_vm0, %v3267_v0 }
 0xd8f   :  { %3020 = vmatprep.subr.mxu1 %v3267_v0 }
 0xd91   :  { %3013 = vmatmul.mubr.msk.f32.vlgmr.msra.gmra.mxu1 %vm503_vm12, %v1811_v42  ;;  %v2347_v42 = vrot.slane %v3603_v34, %v1217_v23  ;;  %v2752_v23 = vld [vmem:[%s3798_s9 + $0x58] sm:$0xff] }
 0xd92   :  { %v3139_v43 = vpop.eup %3138  ;;  %3021 = vmatpush3.msra.mxu1 %v1983_v41  ;;  %3022 = vmatprep.mubr.msk.f32.mxu1 %vm3268_vm0, %v3267_v0 }
 0xd93   :  { %3030 = vmatprep.subr.mxu1 %v3267_v0  ;;  %v1981_v45 = vmul.f32 %v3139_v43, %v3131_v20  ;;  %v2747_v20 = vld [vmem:[%s3797_s8 + $0x30] sm:$0xff] }
 0xd95   :  { %3023 = vmatmul.mubr.msk.f32.vlgmr.msra.gmra.mxu1 %vm503_vm12, %v1981_v45 }
 0xd96   :  { %v3141_v46 = vpop.eup %3140  ;;  %3031 = vmatpush3.msra.mxu1 %v2149_v33  ;;  %3032 = vmatprep.mubr.msk.f32.mxu1 %vm3268_vm0, %v3267_v0  ;;  %v2353_v33 = vrot.slane %v3603_v34, %v1223_v24  ;;  %v2751_v24 = vld [vmem:[%s3798_s9 + $0x50] sm:$0xff] }
 0xd97   :  { %v2147_v47 = vmul.f32 %v3141_v46, %v3133_v22  ;;  %v2745_v22 = vld [vmem:[%s3797_s8 + $0x20] sm:$0xff] }
 0xd99   :  { %3033 = vmatmul.mubr.msk.f32.vlgmr.msra.gmra.mxu1 %vm503_vm12, %v2147_v47 }
 0xe4d   :  { %v1718_v48 = vpop.f32.mrf.mxu1 }
 0xe4e   :  { %1722 = vst.msk [vmem:[#allocation3] sm:$0xff] %vm427_vm11, %v1718_v48 }
 0xe4f   :  { %v3004_v51 = vpop.f32.mrf.mxu1 }
 0xe51   :  { %v1884_v55 = vpop.f32.mrf.mxu1 }
 0xe52   :  { %1889 = vrot.lane.b32.xlu0 %v1884_v55, %s3274_s27  ;;  %v2749_v55 = vld [vmem:[%s3798_s9 + $0x40] sm:$0xff] }
 0xe53   :  { %v3014_v57 = vpop.f32.mrf.mxu1 }
 0xe55   :  { %v2054_v58 = vpop.f32.mrf.mxu1 }
 0xe56   :  { %2058 = vst.msk [vmem:[#allocation3 + $0x8] sm:$0xff] %vm427_vm11, %v2054_v58 }
 0xe57   :  { %v3024_v59 = vpop.f32.mrf.mxu1 }
 0xe59   :  { %v2220_v60 = vpop.f32.mrf.mxu1 }
 0xe5a   :  { %2225 = vrot.lane.b32.xlu1 %v2220_v60, %s3274_s27 }
 0xe5b   :  { %v3034_v61 = vpop.f32.mrf.mxu1 }
 0xec4   :  { %v1890_v62 = vpop.permute.xlu0 %1889 }
 0xec5   :  { %1892 = vst.msk [vmem:[#allocation3] sm:$0xff] %vm761_vm13, %v1890_v62 }
 0xecc   :  { %v2226_v63 = vpop.permute.xlu1 %2225  ;;  %v2229_v1 = vld [vmem:[#allocation3] sm:$0xff] }
 0xecd   :  { %2228 = vst.msk [vmem:[#allocation3 + $0x8] sm:$0xff] %vm761_vm13, %v2226_v63  ;;  %3043 = vmatprep.mubr.msk.f32.mxu0 %vm340_vm10, %v2229_v1  ;;  %v2446_v63 = vrot.slane %v3603_v34, %v1316_v52 }
 0xed4   :  { %v2230_v2 = vld [vmem:[#allocation3 + $0x8] sm:$0xff] }
 0xed5   :  { %3044 = vmatmul.mubr.msk.f32.vlgmr.msra.gmra.mxu0 %vm340_vm10, %v2230_v2 }
 0xed6   :  { %3058 = vmatpush3.msra.mxu0 %v2756_v25 }
 0xed7   :  { %3059 = vmatprep.subr.mxu0 %v2755_v26 }
 0xed8   :  { %3060 = vmatpush3.msra.mxu0 %v2755_v26 }
 0xed9   :  { %3061 = vmatprep.subr.mxu0 %v2754_v27 }
 0xeda   :  { %3062 = vmatpush3.msra.mxu0 %v2754_v27 }
 0xedb   :  { %3063 = vmatprep.subr.mxu0 %v2753_v28 }
 0xedc   :  { %3064 = vmatpush3.msra.mxu0 %v2753_v28 }
 0xedd   :  { %3065 = vmatprep.subr.mxu0 %v2752_v23 }
 0xede   :  { %3066 = vmatpush3.msra.mxu0 %v2752_v23 }
 0xedf   :  { %3067 = vmatprep.subr.mxu0 %v2751_v24 }
 0xee0   :  { %3068 = vmatpush3.msra.mxu0 %v2751_v24 }
 0xee1   :  { %3069 = vmatprep.subr.mxu0 %v2750_v53 }
 0xee2   :  { %3070 = vmatpush3.msra.mxu0 %v2750_v53  ;;  %v2777_v53 = vld [vmem:[#allocation4 + $0xa] ss:$0 sm:$0xff] }
 0xee3   :  { %3071 = vmatprep.subr.mxu0 %v2749_v55 }
 0xee4   :  { %3072 = vmatpush3.msra.mxu0 %v2749_v55 }
 0xf95   :  { %v3045_v4 = vpop.f32.mrf.mxu0 }
 0xf96   :  { %v2313_v5 = vadd.f32 %v3045_v4, %v2234_v3 }
 0xf97   :  { %v2307_v6 = vpop.f32.mrf.mxu0 }
 0xf98   :  { %v2308_v7 = vadd.f32 %v2307_v6, %v2234_v3  ;;  %v2317_v8 = vadd.f32 %v2313_v5, %v3597_v38 }
 0xf9a   :  { %v2321_v9 = vsel %vm340_vm10, %v2317_v8, 0.0  ;;  %v2316_v30 = vadd.f32 %v2308_v7, %v3593_v37  ;;  %v2748_v37 = vld [vmem:[%s3797_s8 + $0x38] sm:$0xff] }
 0xf9b   :  { %2322 = vadd.xlane.f32.xlu1 %v2321_v9  ;;  %3046 = vmatprep.subr.mxu1 %v2748_v37 }
 0xf9c   :  { %v2318_v29 = vsel %vm340_vm10, %v2316_v30, 0.0  ;;  %3047 = vmatpush3.msra.mxu1 %v2748_v37 }
 0xf9d   :  { %2319 = vadd.xlane.f32.xlu0 %v2318_v29  ;;  %3048 = vmatprep.subr.mxu1 %v2747_v20 }
 0xf9e   :  { %3049 = vmatpush3.msra.mxu1 %v2747_v20  ;;  %v2559_v20 = vrot.slane %v3603_v34, %v1430_v18 }
 0xf9f   :  { %3050 = vmatprep.subr.mxu1 %v2746_v21 }
 0xfa0   :  { %3051 = vmatpush3.msra.mxu1 %v2746_v21 }
 0xfa1   :  { %3052 = vmatprep.subr.mxu1 %v2745_v22 }
 0xfa2   :  { %3053 = vmatpush3.msra.mxu1 %v2745_v22  ;;  %v2565_v22 = vrot.slane %v3603_v34, %v1436_v19 }
 0xfa3   :  { %3076 = vmatprep.subr.mxu1 %v3267_v0 }
0x1024   :  { %v2323_v10 = vpop.xlane.xlu1 %2322 }
0x1025   :  { %v2325_v11 = vmul.f32 0.03125, %v2323_v10 }
0x1026   :  { %v2320_v12 = vpop.xlane.xlu0 %2319 }
0x1027   :  { %v2324_v13 = vmul.f32 0.03125, %v2320_v12  ;;  %v2327_v14 = vsub.f32 %v2317_v8, %v2325_v11 }
0x1029   :  { %v2326_v54 = vsub.f32 %v2316_v30, %v2324_v13  ;;  %v2329_v17 = vmul.f32 %v2327_v14, %v2327_v14 }
0x102b   :  { %v2328_v15 = vmul.f32 %v2326_v54, %v2326_v54  ;;  %v2333_v38 = vsel %vm340_vm10, %v2329_v17, 0.0 }
0x102d   :  { %v2330_v16 = vsel %vm340_vm10, %v2328_v15, 0.0 }
0x102e   :  { %2331 = vadd.xlane.f32.xlu0 %v2330_v16 }
0x1032   :  { %2334 = vadd.xlane.f32.xlu0 %v2333_v38 }
0x10b7   :  { %v2332_v31 = vpop.xlane.xlu0 %2331 }
0x10b8   :  { %v2336_v35 = vmul.f32 0.03125, %v2332_v31 }
0x10ba   :  { %v2338_v36 = vadd.f32 1e-05, %v2336_v35 }
0x10bb   :  { %v2335_v39 = vpop.xlane.xlu0 %2334 }
0x10bc   :  { %3142 = vrsqrt.f32 %v2338_v36  ;;  %v2337_v40 = vmul.f32 0.03125, %v2335_v39 }
0x10be   :  { %v2339_v41 = vadd.f32 1e-05, %v2337_v40 }
0x10c0   :  { %3144 = vrsqrt.f32 %v2339_v41 }
0x10c9   :  { %v3143_v43 = vpop.eup %3142 }
0x10ca   :  { %v2342_v45 = vmul.f32 %v3143_v43, %v2326_v54 }
0x10cc   :  { %v2348_v46 = vmul.f32 %v2347_v42, %v2342_v45 }
0x10cd   :  { %v3145_v47 = vpop.eup %3144 }
0x10ce   :  { %v2343_v48 = vmul.f32 %v3145_v47, %v2327_v14  ;;  %v2354_v49 = vadd.f32 %v2353_v33, %v2348_v46  ;;  %v2602_v46 = vld [vmem:[#allocation11 + $0x10] sm:$0xff]  ;;  %v2601_v47 = vld [vmem:[#allocation11 + $0x8] sm:$0xff] }
0x10d0   :  { %v2349_v50 = vmul.f32 %v2347_v42, %v2343_v48  ;;  %3054 = vmatprep.mubr.msk.f32.mxu1 %vm340_vm10, %v2354_v49  ;;  %v2600_v48 = vld [vmem:[#allocation11] sm:$0xff] }
0x10d2   :  { %v2355_v51 = vadd.f32 %v2353_v33, %v2349_v50  ;;  %v2603_v33 = vld [vmem:[#allocation11 + $0x18] sm:$0xff] }
0x10d4   :  { %3055 = vmatmul.mubr.msk.f32.vlgmr.msra.gmra.mxu1 %vm340_vm10, %v2355_v51 }
0x10d5   :  { %3084 = vmatprep.mubr.msk.f32.mxu1 %vm3268_vm0, %v3267_v0  ;;  %3077 = vmatpush3.msra.mxu1 %v2603_v33  ;;  %vm2695_vm0 = vcmask 123904  }
0x10d6   :  { %3078 = vmatprep.subr.mxu1 %v3267_v0 }
0x10d7   :  { %3079 = vmatpush3.msra.mxu1 %v2602_v46 }
0x10d8   :  { %3080 = vmatprep.subr.mxu1 %v3267_v0 }
0x10d9   :  { %3081 = vmatpush3.msra.mxu1 %v2601_v47 }
0x10da   :  { %3082 = vmatprep.subr.mxu1 %v3267_v0  ;;  %v2779_v0 = vld [vmem:[#allocation4 + $0xc] ss:$0 sm:$0xff] }
0x10db   :  { %3083 = vmatpush3.msra.mxu1 %v2600_v48 }
0x1194   :  { %v3056_v57 = vpop.f32.mrf.mxu1 }
0x1195   :  { %v2438_v58 = vadd.f32 %v3056_v57, %v2359_v56 }
0x1196   :  { %v2432_v59 = vpop.f32.mrf.mxu1 }
0x1197   :  { %v2433_v60 = vadd.f32 %v2432_v59, %v2359_v56  ;;  %v2442_v62 = vmax.f32 %v2438_v58, 0.0  ;;  %v2778_v56 = vld [vmem:[#allocation4 + $0xb] ss:$0 sm:$0xff] }
0x1199   :  { %v2441_v61 = vmax.f32 %v2433_v60, 0.0 }
0x119b   :  { %3073 = vmatprep.mubr.msk.f32.mxu0 %vm1318_vm14, %v2441_v61 }
0x119c   :  { %3074 = vmatmul.mubr.msk.f32.vlgmr.msra.gmra.mxu0 %vm1318_vm14, %v2442_v62 }
0x125c   :  { %v3075_v1 = vpop.f32.mrf.mxu0 }
0x125d   :  { %v2525_v2 = vadd.f32 %v3075_v1, %v2446_v63 }
0x125e   :  { %v2519_v3 = vpop.f32.mrf.mxu0 }
0x125f   :  { %v2520_v4 = vadd.f32 %v2519_v3, %v2446_v63  ;;  %v2529_v5 = vadd.f32 %v2525_v2, %v2355_v51 }
0x1261   :  { %v2533_v44 = vsel %vm340_vm10, %v2529_v5, 0.0  ;;  %v2528_v6 = vadd.f32 %v2520_v4, %v2354_v49  ;;  %v2684_v49 = vld [vmem:[%s3791_s2] sm:$0x3] }
0x1262   :  { %2534 = vadd.xlane.f32.xlu1 %v2533_v44 }
0x1263   :  { %v2530_v7 = vsel %vm340_vm10, %v2528_v6, 0.0 }
0x1264   :  { %2531 = vadd.xlane.f32.xlu0 %v2530_v7 }
0x12eb   :  { %v2535_v8 = vpop.xlane.xlu1 %2534 }
0x12ec   :  { %v2537_v9 = vmul.f32 0.03125, %v2535_v8 }
0x12ed   :  { %v2532_v30 = vpop.xlane.xlu0 %2531 }
0x12ee   :  { %v2539_v29 = vsub.f32 %v2529_v5, %v2537_v9  ;;  %v2536_v10 = vmul.f32 0.03125, %v2532_v30 }
0x12f0   :  { %v2538_v11 = vsub.f32 %v2528_v6, %v2536_v10  ;;  %v2541_v12 = vmul.f32 %v2539_v29, %v2539_v29 }
0x12f2   :  { %v2545_v52 = vsel %vm340_vm10, %v2541_v12, 0.0  ;;  %v2540_v13 = vmul.f32 %v2538_v11, %v2538_v11 }
0x12f3   :  { %2546 = vadd.xlane.f32.xlu1 %v2545_v52 }
0x12f4   :  { %v2542_v14 = vsel %vm340_vm10, %v2540_v13, 0.0 }
0x12f5   :  { %2543 = vadd.xlane.f32.xlu0 %v2542_v14 }
0x137c   :  { %v2547_v54 = vpop.xlane.xlu1 %2546 }
0x137d   :  { %v2549_v15 = vmul.f32 0.03125, %v2547_v54 }
0x137e   :  { %v2544_v16 = vpop.xlane.xlu0 %2543 }
0x137f   :  { %v2551_v17 = vadd.f32 1e-05, %v2549_v15  ;;  %v2548_v38 = vmul.f32 0.03125, %v2544_v16 }
0x1381   :  { %3146 = vrsqrt.f32 %v2551_v17  ;;  %v2550_v37 = vadd.f32 1e-05, %v2548_v38 }
0x1383   :  { %3148 = vrsqrt.f32 %v2550_v37 }
0x138e   :  { %v3147_v21 = vpop.eup %3146 }
0x138f   :  { %v2555_v25 = vmul.f32 %v3147_v21, %v2539_v29 }
0x1390   :  { %v3149_v26 = vpop.eup %3148 }
0x1391   :  { %v2561_v27 = vmul.f32 %v2559_v20, %v2555_v25  ;;  %v2554_v28 = vmul.f32 %v3149_v26, %v2538_v11 }
0x1393   :  { %v2567_v31 = vadd.f32 %v2565_v22, %v2561_v27  ;;  %v2560_v35 = vmul.f32 %v2559_v20, %v2554_v28 }
0x1395   :  { %2569 = vst.msk [vmem:[#allocation2 + $0x8] sm:$0xff] %vm340_vm10, %v2567_v31  ;;  %v2566_v36 = vadd.f32 %v2565_v22, %v2560_v35 }
0x1397   :  { %2568 = vst.msk [vmem:[#allocation2] sm:$0xff] %vm340_vm10, %v2566_v36 }
0x139c   :  { %v2571_v39 = vld [vmem:[#allocation2 + $0x8] sm:$0x1] }
0x139d   :  { %v2573_v40 = vrot.slane %v2571_v39, 7 }
0x139e   :  { %v2570_v18 = vld [vmem:[#allocation2] sm:$0x1] }
0x139f   :  { %v2575_v41 = vsel %vm212_vm3, %v2570_v18, %v2573_v40 }
0x13a0   :  { %v2577_v32 = vsel %vm2576_vm15, %v2575_v41, 0.0 }
0x13a1   :  { %2578 = vadd.xlane.f32.xlu1 %v2577_v32 }
0x13b2   :  { %2686 = vrot.lane.b32.xlu1 %v2684_v49, %s3274_s27 }
0x142a   :  { %v2579_v19 = vpop.xlane.xlu1 %2578 }
0x142b   :  { %v2580_v34 = vmul.f32 0.03125, %v2579_v19 }
0x142d   :  { %v2581_v42 = vsub.f32 %v2575_v41, %v2580_v34 }
0x142e   :  { %v2687_v1 = vpop.permute.xlu1 %2686 }
0x142f   :  { %v2582_v43 = vmul.f32 %v2581_v42, %v2581_v42 }
0x1431   :  { %v2583_v45 = vsel %vm2576_vm15, %v2582_v43, 0.0 }
0x1432   :  { %2584 = vadd.xlane.f32.xlu0 %v2583_v45 }
0x14bb   :  { %v2585_v50 = vpop.xlane.xlu0 %2584 }
0x14bc   :  { %v2586_v51 = vmul.f32 0.03125, %v2585_v50 }
0x14be   :  { %v2587_v23 = vadd.f32 1e-05, %v2586_v51 }
0x14c0   :  { %3150 = vrsqrt.f32 %v2587_v23 }
0x14cd   :  { %v3151_v24 = vpop.eup %3150 }
0x14ce   :  { %v2589_v55 = vmul.f32 %v3151_v24, %v2581_v42 }
0x14d0   :  { %v2594_v57 = vmul.f32 %v2777_v53, %v2589_v55 }
0x14d2   :  { %v2599_v58 = vadd.f32 %v2778_v56, %v2594_v57 }
0x14d4   :  { %3085 = vmatmul.mubr.msk.f32.vlgmr.msra.gmra.mxu1 %vm340_vm10, %v2599_v58 }
0x1594   :  { %v2677_v59 = vpop.f32.mrf.mxu1 }
0x1595   :  { %v2678_v60 = vadd.f32 %v2779_v0, %v2677_v59 }
0x1596   :  { %v3086_v61 = vpop.f32.mrf.mxu1 }
0x1597   :  { %v2681_v62 = vmul.f32 0.5, %v2678_v60  ;;  %2699 = vrot.lane.b32.xlu1 %v2678_v60, %s3270_s19  ;;  %2697 = vst.msk [vmem:[%s3801_s12 + $0x2] sm:$0x3] %vm2695_vm0, %v2678_v60 }
0x1599   :  { %v2682_v63 = vmul.f32 1.442695, %v2681_v62 }
0x159b   :  { %3152 = vpow2.f32 %v2682_v63 }
0x15a8   :  { %v3153_v2 = vpop.eup %3152 }
0x15a9   :  { %v2689_v3 = vmul.f32 %v3153_v2, %v2687_v1 }
0x15ab   :  { %2691 = vrot.lane.b32.xlu0 %v2689_v3, %s3270_s19 }
0x1609   :  { %v2700_v4 = vpop.permute.xlu1 %2699 }
0x160a   :  { %2702 = vst.msk [vmem:[%s3801_s12 + $0x4] sm:$0x3] %vm2695_vm0, %v2700_v4 }
0x161d   :  { %v2692_v5 = vpop.permute.xlu0 %2691 }
0x161e   :  { %v2694_v44 = vadd.f32 %v2692_v5, %v2678_v60 }
0x1620   :  { %2696 = vst.msk [vmem:[%s3801_s12] sm:$0x3] %vm2695_vm0, %v2694_v44 }
0x1621   :  { %2707 = vsyncpa [#allocation5], 1 }
0x1622   :  { %2708 = vsyncpa [#allocation7], 1 }
0x1623   :  { %2709 = vsyncpa [#allocation10], 1 }

</bundles_post_ra>
